<compile_context>
chip_gen: v7x
topology: tpu7x:2x2x1
jax: 0.10.0
libtpu: 0.0.40
codegen_flags: <defaults>
</compile_context>

<pallas_src>
import functools

import jax
import jax.numpy as jnp
from jax.experimental import pallas as pl
from jax.experimental.pallas import tpu as pltpu

EPS = 1e-5  # BatchNorm1d default eps


# ----------------------------------------------------------------------------
# In-kernel building blocks
# ----------------------------------------------------------------------------
def _conv_gap_compute(patches, conv_w, conv_b, batch, hw):
    """3x3 conv (im2col, one 2-D MXU matmul) + bias + ReLU + global avg pool.

    patches: [batch*hw, P]  conv_w: [P, C]  conv_b: [1, C]  ->  [batch, C]
    """
    y = jnp.dot(patches.astype(jnp.bfloat16), conv_w.astype(jnp.bfloat16),
                preferred_element_type=jnp.float32)        # [batch*hw, C]
    y = jnp.maximum(y + conv_b, 0.0)                        # bias + ReLU (f32)
    # Global average pool per sample; hw is a multiple of 8 so the static
    # sublane slices stay aligned.
    rows = [jnp.mean(y[b * hw:(b + 1) * hw, :], axis=0, keepdims=True)
            for b in range(batch)]
    return jnp.concatenate(rows, axis=0)                    # [batch, C]


def _mlp_head_compute(x, w1, gamma, beta, w2, b2, n_rows):
    """Linear -> BatchNorm1d (train-mode batch stats) -> ReLU -> Linear.

    The first Linear's bias is folded away: a per-feature constant shift is
    removed exactly by BN's mean subtraction, so it never contributes.
    """
    h = jnp.dot(x.astype(jnp.bfloat16), w1.astype(jnp.bfloat16),
                preferred_element_type=jnp.float32)         # [n_rows, H]
    inv_n = 1.0 / n_rows
    s = jnp.sum(h, axis=0, keepdims=True)                   # single-pass stats
    ss = jnp.sum(h * h, axis=0, keepdims=True)
    mean = s * inv_n
    var = jnp.maximum(ss * inv_n - mean * mean, 0.0)        # biased, clamped
    hn = (h - mean) * jax.lax.rsqrt(var + EPS)
    hn = jnp.maximum(hn * gamma + beta, 0.0)                # affine + ReLU
    return (jnp.dot(hn.astype(jnp.bfloat16), w2.astype(jnp.bfloat16),
                    preferred_element_type=jnp.float32) + b2)


# ----------------------------------------------------------------------------
# Fused branch kernels (one grid step == one augmented view)
# ----------------------------------------------------------------------------
def _online_kernel(patches_ref, cw_ref, cb_ref,
                   pw1_ref, pg_ref, pbe_ref, pw2_ref, pb2_ref,
                   qw1_ref, qg_ref, qbe_ref, qw2_ref, qb2_ref,
                   out_ref, *, batch, hw):
    """online encoder (conv+GAP) -> projection head -> predictor head."""
    feats = _conv_gap_compute(patches_ref[0], cw_ref[...], cb_ref[...],
                              batch, hw)
    proj = _mlp_head_compute(feats, pw1_ref[...], pg_ref[...], pbe_ref[...],
                             pw2_ref[...], pb2_ref[...], batch)
    pred = _mlp_head_compute(proj, qw1_ref[...], qg_ref[...], qbe_ref[...],
                             qw2_ref[...], qb2_ref[...], batch)
    out_ref[0] = pred


def _target_kernel(patches_ref, cw_ref, cb_ref,
                   pw1_ref, pg_ref, pbe_ref, pw2_ref, pb2_ref,
                   out_ref, *, batch, hw):
    """target encoder (conv+GAP) -> projection head."""
    feats = _conv_gap_compute(patches_ref[0], cw_ref[...], cb_ref[...],
                              batch, hw)
    proj = _mlp_head_compute(feats, pw1_ref[...], pg_ref[...], pbe_ref[...],
                             pw2_ref[...], pb2_ref[...], batch)
    out_ref[0] = proj


# ----------------------------------------------------------------------------
# pallas_call wrapper
# ----------------------------------------------------------------------------
def _param_spec(arr):
    # Full-array block, replicated across the view grid axis.
    return pl.BlockSpec(arr.shape, lambda v: (0,) * arr.ndim)


def _run_branch(kernel_fn, patches_views, params_list, d_out, batch, hw):
    n_views, bhw, p = patches_views.shape
    in_specs = [pl.BlockSpec((1, bhw, p), lambda v: (v, 0, 0))]
    in_specs += [_param_spec(a) for a in params_list]
    return pl.pallas_call(
        functools.partial(kernel_fn, batch=batch, hw=hw),
        out_shape=jax.ShapeDtypeStruct((n_views, batch, d_out), jnp.float32),
        grid_spec=pltpu.PrefetchScalarGridSpec(
            num_scalar_prefetch=0,
            grid=(n_views,),
            in_specs=in_specs,
            out_specs=pl.BlockSpec((1, batch, d_out), lambda v: (v, 0, 0)),
        ),
        compiler_params=pltpu.CompilerParams(
            dimension_semantics=("parallel",),   # views -> both TCs on v7x
        ),
    )(patches_views, *params_list)


# ----------------------------------------------------------------------------
# Glue: im2col, parameter init, BYOL forward
# ----------------------------------------------------------------------------
def im2col_nchw(x_nchw, k=3):
    """NCHW input -> patches [B, H*W, K*K*Cin] (stride 1, pad 1). Runs in XLA.

    # TODO(synk): fold im2col into the kernel (9 shifted matmuls on a VMEM
    # NHWC tile) if B or H*W are scaled up enough for the 9x patch expansion
    # to matter; negligible at 16x16.
    """
    x = jnp.transpose(x_nchw, (0, 2, 3, 1))                 # -> NHWC
    B, H, W, C = x.shape
    xp = jnp.pad(x, ((0, 0), (1, 1), (1, 1), (0, 0)))
    cols = [xp[:, dh:dh + H, dw:dw + W, :]
            for dh in range(k) for dw in range(k)]
    patches = jnp.stack(cols, axis=3)                       # [B, H, W, K*K, C]
    return patches.reshape(B, H * W, k * k * C)


def init_mlp_head(key, d_in, d_hidden, d_out):
    k1, k2, k3, k4 = jax.random.split(key, 4)
    s1 = 1.0 / jnp.sqrt(d_in)
    s2 = 1.0 / jnp.sqrt(d_hidden)
    return {
        "w1": jax.random.uniform(k1, (d_in, d_hidden), jnp.float32, -s1, s1),
        # b1 is kept for parameter parity with nn.Linear but is mathematically
        # absorbed by the following BatchNorm (train mode), so it is not fed
        # to the kernel.
        "b1": jax.random.uniform(k2, (1, d_hidden), jnp.float32, -s1, s1),
        "gamma": jnp.ones((1, d_hidden), jnp.float32),
        "beta": jnp.zeros((1, d_hidden), jnp.float32),
        "w2": jax.random.uniform(k3, (d_hidden, d_out), jnp.float32, -s2, s2),
        "b2": jax.random.uniform(k4, (1, d_out), jnp.float32, -s2, s2),
    }


def init_encoder(key, c_in, c_feat, d_hidden, d_proj, k=3):
    k1, k2, k3 = jax.random.split(key, 3)
    fan_in = c_in * k * k
    s = 1.0 / jnp.sqrt(fan_in)
    return {
        "conv_w": jax.random.uniform(k1, (fan_in, c_feat), jnp.float32, -s, s),
        "conv_b": jax.random.uniform(k2, (1, c_feat), jnp.float32, -s, s),
        "proj": init_mlp_head(k3, c_feat, d_hidden, d_proj),
    }


def _head_args(head):
    return [head["w1"], head["gamma"], head["beta"], head["w2"], head["b2"]]


def byol_forward(params, x, y):
    B = x.shape[0]
    HW = x.shape[2] * x.shape[3]
    px = im2col_nchw(x)
    py = im2col_nchw(y)
    P = px.shape[-1]
    # Stack both augmented views along a leading "view" axis; cast the
    # dominant activation tensor to bf16 (MXU operand dtype, half the DMA).
    patches_views = jnp.stack(
        [px.reshape(B * HW, P), py.reshape(B * HW, P)], axis=0
    ).astype(jnp.bfloat16)                                   # [2, B*HW, P]

    on, tg = params["online"], params["target"]
    online_args = ([on["conv_w"], on["conv_b"]]
                   + _head_args(on["proj"])
                   + _head_args(params["predictor"]))
    target_args = [tg["conv_w"], tg["conv_b"]] + _head_args(tg["proj"])

    d_feat = params["predictor"]["w2"].shape[1]
    d_proj = on["proj"]["w2"].shape[1]

    # Online branch: encoder + projection + predictor, both views, ONE call.
    pred = _run_branch(_online_kernel, patches_views, online_args,
                       d_feat, B, HW)                        # [2, B, d_feat]
    # Target branch (torch.no_grad()): encoder + projection, both views.
    target = jax.lax.stop_gradient(
        _run_branch(_target_kernel, patches_views, target_args,
                    d_proj, B, HW))                          # [2, B, d_proj]

    return pred[0], pred[1], target[0], target[1]


# ----------------------------------------------------------------------------
if __name__ == "__main__":
    # small config: batch=2, in-channels=4, spatial=16, encoder feats=32,
    # num_hidden=32, num_projection=16, num_features=16
    B, C_IN, HW = 2, 4, 16
    C_FEAT, NUM_HIDDEN, NUM_PROJ, NUM_FEATURES = 32, 32, 16, 16

    root = jax.random.PRNGKey(0)
    k_online, k_target, k_pred, k_x, k_y = jax.random.split(root, 5)

    params = {
        "online": init_encoder(k_online, C_IN, C_FEAT, NUM_HIDDEN, NUM_PROJ),
        "target": init_encoder(k_target, C_IN, C_FEAT, NUM_HIDDEN, NUM_PROJ),
        "predictor": init_mlp_head(k_pred, NUM_PROJ, NUM_HIDDEN, NUM_FEATURES),
    }

    x = jax.random.normal(k_x, (B, C_IN, HW, HW), jnp.float32)  # NCHW like torch
    y = jax.random.normal(k_y, (B, C_IN, HW, HW), jnp.float32)

    pred_1, pred_2, target_1, target_2 = jax.jit(byol_forward)(params, x, y)
    jax.block_until_ready((pred_1, pred_2, target_1, target_2))

    assert pred_1.shape == (B, NUM_FEATURES)
    assert pred_2.shape == (B, NUM_FEATURES)
    assert target_1.shape == (B, NUM_PROJ)
    assert target_2.shape == (B, NUM_PROJ)
    print("KERNEL_OK")
</pallas_src>

<mosaic_0001>
module attributes {stable_mosaic.version = 11 : i64} {
  func.func @_target_kernel(%arg0: i32, %arg1: memref<1x512x36xbf16, #tpu.memory_space<vmem>>, %arg2: memref<36x32xf32, #tpu.memory_space<vmem>>, %arg3: memref<1x32xf32, #tpu.memory_space<vmem>>, %arg4: memref<32x32xf32, #tpu.memory_space<vmem>>, %arg5: memref<1x32xf32, #tpu.memory_space<vmem>>, %arg6: memref<1x32xf32, #tpu.memory_space<vmem>>, %arg7: memref<32x16xf32, #tpu.memory_space<vmem>>, %arg8: memref<1x16xf32, #tpu.memory_space<vmem>>, %arg9: memref<1x2x16xf32, #tpu.memory_space<vmem>>) attributes {dimension_semantics = [#tpu.dimension_semantics<parallel>], iteration_bounds = array<i64: 2>, scalar_prefetch = 0 : i64, scratch_operands = 0 : i64, tpu.core_type = #tpu.core_type<tc>, window_params = [{transform_indices = @transform_0, window_bounds = array<i64: 1, 512, 36>}, {pipeline_mode = #tpu.pipeline_mode<synchronous>, transform_indices = @transform_1, window_bounds = array<i64: 36, 32>}, {pipeline_mode = #tpu.pipeline_mode<synchronous>, transform_indices = @transform_2, window_bounds = array<i64: 1, 32>}, {pipeline_mode = #tpu.pipeline_mode<synchronous>, transform_indices = @transform_3, window_bounds = array<i64: 32, 32>}, {pipeline_mode = #tpu.pipeline_mode<synchronous>, transform_indices = @transform_4, window_bounds = array<i64: 1, 32>}, {pipeline_mode = #tpu.pipeline_mode<synchronous>, transform_indices = @transform_5, window_bounds = array<i64: 1, 32>}, {pipeline_mode = #tpu.pipeline_mode<synchronous>, transform_indices = @transform_6, window_bounds = array<i64: 32, 16>}, {pipeline_mode = #tpu.pipeline_mode<synchronous>, transform_indices = @transform_7, window_bounds = array<i64: 1, 16>}, {transform_indices = @transform_8, window_bounds = array<i64: 1, 2, 16>}]} {
    %c0 = arith.constant 0 : index
    %c0_0 = arith.constant 0 : index
    %c0_1 = arith.constant 0 : index
    %0 = vector.load %arg1[%c0, %c0_0, %c0_1] : memref<1x512x36xbf16, #tpu.memory_space<vmem>>, vector<1x512x36xbf16>
    %1 = vector.shape_cast %0 : vector<1x512x36xbf16> to vector<512x36xbf16>
    %c0_2 = arith.constant 0 : index
    %c0_3 = arith.constant 0 : index
    %2 = vector.load %arg2[%c0_2, %c0_3] : memref<36x32xf32, #tpu.memory_space<vmem>>, vector<36x32xf32>
    %c0_4 = arith.constant 0 : index
    %c0_5 = arith.constant 0 : index
    %3 = vector.load %arg3[%c0_4, %c0_5] : memref<1x32xf32, #tpu.memory_space<vmem>>, vector<1x32xf32>
    %4 = arith.truncf %2 : vector<36x32xf32> to vector<36x32xbf16>
    %cst = arith.constant dense<0.000000e+00> : vector<512x32xf32>
    %5 = tpu.matmul %1, %4, %cst {dimension_numbers = #tpu.dot_dimension_numbers<[1], [0], [0], [1], [0, 0, 1, 1], [], []>} : vector<512x36xbf16>, vector<36x32xbf16>, vector<512x32xf32> -> vector<512x32xf32>
    %6 = vector.broadcast %3 : vector<1x32xf32> to vector<512x32xf32>
    %7 = arith.addf %5, %6 : vector<512x32xf32>
    %cst_6 = arith.constant 0.000000e+00 : f32
    %8 = vector.broadcast %cst_6 : f32 to vector<512x32xf32>
    %9 = arith.maximumf %7, %8 : vector<512x32xf32>
    %10 = vector.extract_strided_slice %9 {offsets = [0, 0], sizes = [256, 32], strides = [1, 1]} : vector<512x32xf32> to vector<256x32xf32>
    %cst_7 = arith.constant dense<0.000000e+00> : vector<32xf32>
    %11 = vector.multi_reduction <add>, %10, %cst_7 [0] : vector<256x32xf32> to vector<32xf32>
    %12 = vector.shape_cast %11 : vector<32xf32> to vector<1x32xf32>
    %cst_8 = arith.constant 2.560000e+02 : f32
    %13 = vector.broadcast %cst_8 : f32 to vector<1x32xf32>
    %14 = arith.divf %12, %13 : vector<1x32xf32>
    %15 = vector.extract_strided_slice %9 {offsets = [256, 0], sizes = [256, 32], strides = [1, 1]} : vector<512x32xf32> to vector<256x32xf32>
    %cst_9 = arith.constant dense<0.000000e+00> : vector<32xf32>
    %16 = vector.multi_reduction <add>, %15, %cst_9 [0] : vector<256x32xf32> to vector<32xf32>
    %17 = vector.shape_cast %16 : vector<32xf32> to vector<1x32xf32>
    %cst_10 = arith.constant 2.560000e+02 : f32
    %18 = vector.broadcast %cst_10 : f32 to vector<1x32xf32>
    %19 = arith.divf %17, %18 : vector<1x32xf32>
    %20 = tpu.concatenate %14, %19 in 0 : vector<1x32xf32>, vector<1x32xf32> -> vector<2x32xf32>
    %c0_11 = arith.constant 0 : index
    %c0_12 = arith.constant 0 : index
    %21 = vector.load %arg4[%c0_11, %c0_12] : memref<32x32xf32, #tpu.memory_space<vmem>>, vector<32x32xf32>
    %c0_13 = arith.constant 0 : index
    %c0_14 = arith.constant 0 : index
    %22 = vector.load %arg5[%c0_13, %c0_14] : memref<1x32xf32, #tpu.memory_space<vmem>>, vector<1x32xf32>
    %c0_15 = arith.constant 0 : index
    %c0_16 = arith.constant 0 : index
    %23 = vector.load %arg6[%c0_15, %c0_16] : memref<1x32xf32, #tpu.memory_space<vmem>>, vector<1x32xf32>
    %c0_17 = arith.constant 0 : index
    %c0_18 = arith.constant 0 : index
    %24 = vector.load %arg7[%c0_17, %c0_18] : memref<32x16xf32, #tpu.memory_space<vmem>>, vector<32x16xf32>
    %c0_19 = arith.constant 0 : index
    %c0_20 = arith.constant 0 : index
    %25 = vector.load %arg8[%c0_19, %c0_20] : memref<1x16xf32, #tpu.memory_space<vmem>>, vector<1x16xf32>
    %26 = arith.truncf %20 : vector<2x32xf32> to vector<2x32xbf16>
    %27 = arith.truncf %21 : vector<32x32xf32> to vector<32x32xbf16>
    %cst_21 = arith.constant dense<0.000000e+00> : vector<2x32xf32>
    %28 = tpu.matmul %26, %27, %cst_21 {dimension_numbers = #tpu.dot_dimension_numbers<[1], [0], [0], [1], [0, 0, 1, 1], [], []>} : vector<2x32xbf16>, vector<32x32xbf16>, vector<2x32xf32> -> vector<2x32xf32>
    %cst_22 = arith.constant dense<0.000000e+00> : vector<32xf32>
    %29 = vector.multi_reduction <add>, %28, %cst_22 [0] : vector<2x32xf32> to vector<32xf32>
    %30 = vector.shape_cast %29 : vector<32xf32> to vector<1x32xf32>
    %31 = arith.mulf %28, %28 : vector<2x32xf32>
    %cst_23 = arith.constant dense<0.000000e+00> : vector<32xf32>
    %32 = vector.multi_reduction <add>, %31, %cst_23 [0] : vector<2x32xf32> to vector<32xf32>
    %33 = vector.shape_cast %32 : vector<32xf32> to vector<1x32xf32>
    %cst_24 = arith.constant 5.000000e-01 : f32
    %34 = vector.broadcast %cst_24 : f32 to vector<1x32xf32>
    %35 = arith.mulf %30, %34 : vector<1x32xf32>
    %cst_25 = arith.constant 5.000000e-01 : f32
    %36 = vector.broadcast %cst_25 : f32 to vector<1x32xf32>
    %37 = arith.mulf %33, %36 : vector<1x32xf32>
    %38 = arith.mulf %35, %35 : vector<1x32xf32>
    %39 = arith.subf %37, %38 : vector<1x32xf32>
    %cst_26 = arith.constant 0.000000e+00 : f32
    %40 = vector.broadcast %cst_26 : f32 to vector<1x32xf32>
    %41 = arith.maximumf %39, %40 : vector<1x32xf32>
    %42 = vector.broadcast %35 : vector<1x32xf32> to vector<2x32xf32>
    %43 = arith.subf %28, %42 : vector<2x32xf32>
    %cst_27 = arith.constant 9.99999974E-6 : f32
    %44 = vector.broadcast %cst_27 : f32 to vector<1x32xf32>
    %45 = arith.addf %41, %44 : vector<1x32xf32>
    %46 = math.rsqrt %45 : vector<1x32xf32>
    %47 = vector.broadcast %46 : vector<1x32xf32> to vector<2x32xf32>
    %48 = arith.mulf %43, %47 : vector<2x32xf32>
    %49 = vector.broadcast %22 : vector<1x32xf32> to vector<2x32xf32>
    %50 = arith.mulf %48, %49 : vector<2x32xf32>
    %51 = vector.broadcast %23 : vector<1x32xf32> to vector<2x32xf32>
    %52 = arith.addf %50, %51 : vector<2x32xf32>
    %cst_28 = arith.constant 0.000000e+00 : f32
    %53 = vector.broadcast %cst_28 : f32 to vector<2x32xf32>
    %54 = arith.maximumf %52, %53 : vector<2x32xf32>
    %55 = arith.truncf %54 : vector<2x32xf32> to vector<2x32xbf16>
    %56 = arith.truncf %24 : vector<32x16xf32> to vector<32x16xbf16>
    %cst_29 = arith.constant dense<0.000000e+00> : vector<2x16xf32>
    %57 = tpu.matmul %55, %56, %cst_29 {dimension_numbers = #tpu.dot_dimension_numbers<[1], [0], [0], [1], [0, 0, 1, 1], [], []>} : vector<2x32xbf16>, vector<32x16xbf16>, vector<2x16xf32> -> vector<2x16xf32>
    %58 = vector.broadcast %25 : vector<1x16xf32> to vector<2x16xf32>
    %59 = arith.addf %57, %58 : vector<2x16xf32>
    %c0_30 = arith.constant 0 : index
    %c0_31 = arith.constant 0 : index
    %c0_32 = arith.constant 0 : index
    %60 = vector.load %arg9[%c0_30, %c0_31, %c0_32] : memref<1x2x16xf32, #tpu.memory_space<vmem>>, vector<1x2x16xf32>
    %61 = vector.shape_cast %60 : vector<1x2x16xf32> to vector<2x16xf32>
    %62 = vector.shape_cast %59 : vector<2x16xf32> to vector<1x2x16xf32>
    tpu.vector_store %arg9[%c0_30, %c0_31, %c0_32], %62 {strides = array<i32>} : memref<1x2x16xf32, #tpu.memory_space<vmem>>, vector<1x2x16xf32>,
    return
  }
  func.func @transform_0(%arg0: i32) -> (i32, i32, i32) {
    %c0_i32 = arith.constant 0 : i32
    %c0_i32_0 = arith.constant 0 : i32
    %c0_i32_1 = arith.constant 0 : i32
    return %arg0, %c0_i32, %c0_i32_0 : i32, i32, i32
  }
  func.func @transform_1(%arg0: i32) -> (i32, i32) {
    %c0_i32 = arith.constant 0 : i32
    %c0_i32_0 = arith.constant 0 : i32
    %c0_i32_1 = arith.constant 0 : i32
    return %c0_i32, %c0_i32_0 : i32, i32
  }
  func.func @transform_2(%arg0: i32) -> (i32, i32) {
    %c0_i32 = arith.constant 0 : i32
    %c0_i32_0 = arith.constant 0 : i32
    %c0_i32_1 = arith.constant 0 : i32
    return %c0_i32, %c0_i32_0 : i32, i32
  }
  func.func @transform_3(%arg0: i32) -> (i32, i32) {
    %c0_i32 = arith.constant 0 : i32
    %c0_i32_0 = arith.constant 0 : i32
    %c0_i32_1 = arith.constant 0 : i32
    return %c0_i32, %c0_i32_0 : i32, i32
  }
  func.func @transform_4(%arg0: i32) -> (i32, i32) {
    %c0_i32 = arith.constant 0 : i32
    %c0_i32_0 = arith.constant 0 : i32
    %c0_i32_1 = arith.constant 0 : i32
    return %c0_i32, %c0_i32_0 : i32, i32
  }
  func.func @transform_5(%arg0: i32) -> (i32, i32) {
    %c0_i32 = arith.constant 0 : i32
    %c0_i32_0 = arith.constant 0 : i32
    %c0_i32_1 = arith.constant 0 : i32
    return %c0_i32, %c0_i32_0 : i32, i32
  }
  func.func @transform_6(%arg0: i32) -> (i32, i32) {
    %c0_i32 = arith.constant 0 : i32
    %c0_i32_0 = arith.constant 0 : i32
    %c0_i32_1 = arith.constant 0 : i32
    return %c0_i32, %c0_i32_0 : i32, i32
  }
  func.func @transform_7(%arg0: i32) -> (i32, i32) {
    %c0_i32 = arith.constant 0 : i32
    %c0_i32_0 = arith.constant 0 : i32
    %c0_i32_1 = arith.constant 0 : i32
    return %c0_i32, %c0_i32_0 : i32, i32
  }
  func.func @transform_8(%arg0: i32) -> (i32, i32, i32) {
    %c0_i32 = arith.constant 0 : i32
    %c0_i32_0 = arith.constant 0 : i32
    %c0_i32_1 = arith.constant 0 : i32
    return %arg0, %c0_i32, %c0_i32_0 : i32, i32, i32
  }
}

module attributes {stable_mosaic.version = 11 : i64} {
  func.func @_online_kernel(%arg0: i32, %arg1: memref<1x512x36xbf16, #tpu.memory_space<vmem>>, %arg2: memref<36x32xf32, #tpu.memory_space<vmem>>, %arg3: memref<1x32xf32, #tpu.memory_space<vmem>>, %arg4: memref<32x32xf32, #tpu.memory_space<vmem>>, %arg5: memref<1x32xf32, #tpu.memory_space<vmem>>, %arg6: memref<1x32xf32, #tpu.memory_space<vmem>>, %arg7: memref<32x16xf32, #tpu.memory_space<vmem>>, %arg8: memref<1x16xf32, #tpu.memory_space<vmem>>, %arg9: memref<16x32xf32, #tpu.memory_space<vmem>>, %arg10: memref<1x32xf32, #tpu.memory_space<vmem>>, %arg11: memref<1x32xf32, #tpu.memory_space<vmem>>, %arg12: memref<32x16xf32, #tpu.memory_space<vmem>>, %arg13: memref<1x16xf32, #tpu.memory_space<vmem>>, %arg14: memref<1x2x16xf32, #tpu.memory_space<vmem>>) attributes {dimension_semantics = [#tpu.dimension_semantics<parallel>], iteration_bounds = array<i64: 2>, scalar_prefetch = 0 : i64, scratch_operands = 0 : i64, tpu.core_type = #tpu.core_type<tc>, window_params = [{transform_indices = @transform_0, window_bounds = array<i64: 1, 512, 36>}, {pipeline_mode = #tpu.pipeline_mode<synchronous>, transform_indices = @transform_1, window_bounds = array<i64: 36, 32>}, {pipeline_mode = #tpu.pipeline_mode<synchronous>, transform_indices = @transform_2, window_bounds = array<i64: 1, 32>}, {pipeline_mode = #tpu.pipeline_mode<synchronous>, transform_indices = @transform_3, window_bounds = array<i64: 32, 32>}, {pipeline_mode = #tpu.pipeline_mode<synchronous>, transform_indices = @transform_4, window_bounds = array<i64: 1, 32>}, {pipeline_mode = #tpu.pipeline_mode<synchronous>, transform_indices = @transform_5, window_bounds = array<i64: 1, 32>}, {pipeline_mode = #tpu.pipeline_mode<synchronous>, transform_indices = @transform_6, window_bounds = array<i64: 32, 16>}, {pipeline_mode = #tpu.pipeline_mode<synchronous>, transform_indices = @transform_7, window_bounds = array<i64: 1, 16>}, {pipeline_mode = #tpu.pipeline_mode<synchronous>, transform_indices = @transform_8, window_bounds = array<i64: 16, 32>}, {pipeline_mode = #tpu.pipeline_mode<synchronous>, transform_indices = @transform_9, window_bounds = array<i64: 1, 32>}, {pipeline_mode = #tpu.pipeline_mode<synchronous>, transform_indices = @transform_10, window_bounds = array<i64: 1, 32>}, {pipeline_mode = #tpu.pipeline_mode<synchronous>, transform_indices = @transform_11, window_bounds = array<i64: 32, 16>}, {pipeline_mode = #tpu.pipeline_mode<synchronous>, transform_indices = @transform_12, window_bounds = array<i64: 1, 16>}, {transform_indices = @transform_13, window_bounds = array<i64: 1, 2, 16>}]} {
    %c0 = arith.constant 0 : index
    %c0_0 = arith.constant 0 : index
    %c0_1 = arith.constant 0 : index
    %0 = vector.load %arg1[%c0, %c0_0, %c0_1] : memref<1x512x36xbf16, #tpu.memory_space<vmem>>, vector<1x512x36xbf16>
    %1 = vector.shape_cast %0 : vector<1x512x36xbf16> to vector<512x36xbf16>
    %c0_2 = arith.constant 0 : index
    %c0_3 = arith.constant 0 : index
    %2 = vector.load %arg2[%c0_2, %c0_3] : memref<36x32xf32, #tpu.memory_space<vmem>>, vector<36x32xf32>
    %c0_4 = arith.constant 0 : index
    %c0_5 = arith.constant 0 : index
    %3 = vector.load %arg3[%c0_4, %c0_5] : memref<1x32xf32, #tpu.memory_space<vmem>>, vector<1x32xf32>
    %4 = arith.truncf %2 : vector<36x32xf32> to vector<36x32xbf16>
    %cst = arith.constant dense<0.000000e+00> : vector<512x32xf32>
    %5 = tpu.matmul %1, %4, %cst {dimension_numbers = #tpu.dot_dimension_numbers<[1], [0], [0], [1], [0, 0, 1, 1], [], []>} : vector<512x36xbf16>, vector<36x32xbf16>, vector<512x32xf32> -> vector<512x32xf32>
    %6 = vector.broadcast %3 : vector<1x32xf32> to vector<512x32xf32>
    %7 = arith.addf %5, %6 : vector<512x32xf32>
    %cst_6 = arith.constant 0.000000e+00 : f32
    %8 = vector.broadcast %cst_6 : f32 to vector<512x32xf32>
    %9 = arith.maximumf %7, %8 : vector<512x32xf32>
    %10 = vector.extract_strided_slice %9 {offsets = [0, 0], sizes = [256, 32], strides = [1, 1]} : vector<512x32xf32> to vector<256x32xf32>
    %cst_7 = arith.constant dense<0.000000e+00> : vector<32xf32>
    %11 = vector.multi_reduction <add>, %10, %cst_7 [0] : vector<256x32xf32> to vector<32xf32>
    %12 = vector.shape_cast %11 : vector<32xf32> to vector<1x32xf32>
    %cst_8 = arith.constant 2.560000e+02 : f32
    %13 = vector.broadcast %cst_8 : f32 to vector<1x32xf32>
    %14 = arith.divf %12, %13 : vector<1x32xf32>
    %15 = vector.extract_strided_slice %9 {offsets = [256, 0], sizes = [256, 32], strides = [1, 1]} : vector<512x32xf32> to vector<256x32xf32>
    %cst_9 = arith.constant dense<0.000000e+00> : vector<32xf32>
    %16 = vector.multi_reduction <add>, %15, %cst_9 [0] : vector<256x32xf32> to vector<32xf32>
    %17 = vector.shape_cast %16 : vector<32xf32> to vector<1x32xf32>
    %cst_10 = arith.constant 2.560000e+02 : f32
    %18 = vector.broadcast %cst_10 : f32 to vector<1x32xf32>
    %19 = arith.divf %17, %18 : vector<1x32xf32>
    %20 = tpu.concatenate %14, %19 in 0 : vector<1x32xf32>, vector<1x32xf32> -> vector<2x32xf32>
    %c0_11 = arith.constant 0 : index
    %c0_12 = arith.constant 0 : index
    %21 = vector.load %arg4[%c0_11, %c0_12] : memref<32x32xf32, #tpu.memory_space<vmem>>, vector<32x32xf32>
    %c0_13 = arith.constant 0 : index
    %c0_14 = arith.constant 0 : index
    %22 = vector.load %arg5[%c0_13, %c0_14] : memref<1x32xf32, #tpu.memory_space<vmem>>, vector<1x32xf32>
    %c0_15 = arith.constant 0 : index
    %c0_16 = arith.constant 0 : index
    %23 = vector.load %arg6[%c0_15, %c0_16] : memref<1x32xf32, #tpu.memory_space<vmem>>, vector<1x32xf32>
    %c0_17 = arith.constant 0 : index
    %c0_18 = arith.constant 0 : index
    %24 = vector.load %arg7[%c0_17, %c0_18] : memref<32x16xf32, #tpu.memory_space<vmem>>, vector<32x16xf32>
    %c0_19 = arith.constant 0 : index
    %c0_20 = arith.constant 0 : index
    %25 = vector.load %arg8[%c0_19, %c0_20] : memref<1x16xf32, #tpu.memory_space<vmem>>, vector<1x16xf32>
    %26 = arith.truncf %20 : vector<2x32xf32> to vector<2x32xbf16>
    %27 = arith.truncf %21 : vector<32x32xf32> to vector<32x32xbf16>
    %cst_21 = arith.constant dense<0.000000e+00> : vector<2x32xf32>
    %28 = tpu.matmul %26, %27, %cst_21 {dimension_numbers = #tpu.dot_dimension_numbers<[1], [0], [0], [1], [0, 0, 1, 1], [], []>} : vector<2x32xbf16>, vector<32x32xbf16>, vector<2x32xf32> -> vector<2x32xf32>
    %cst_22 = arith.constant dense<0.000000e+00> : vector<32xf32>
    %29 = vector.multi_reduction <add>, %28, %cst_22 [0] : vector<2x32xf32> to vector<32xf32>
    %30 = vector.shape_cast %29 : vector<32xf32> to vector<1x32xf32>
    %31 = arith.mulf %28, %28 : vector<2x32xf32>
    %cst_23 = arith.constant dense<0.000000e+00> : vector<32xf32>
    %32 = vector.multi_reduction <add>, %31, %cst_23 [0] : vector<2x32xf32> to vector<32xf32>
    %33 = vector.shape_cast %32 : vector<32xf32> to vector<1x32xf32>
    %cst_24 = arith.constant 5.000000e-01 : f32
    %34 = vector.broadcast %cst_24 : f32 to vector<1x32xf32>
    %35 = arith.mulf %30, %34 : vector<1x32xf32>
    %cst_25 = arith.constant 5.000000e-01 : f32
    %36 = vector.broadcast %cst_25 : f32 to vector<1x32xf32>
    %37 = arith.mulf %33, %36 : vector<1x32xf32>
    %38 = arith.mulf %35, %35 : vector<1x32xf32>
    %39 = arith.subf %37, %38 : vector<1x32xf32>
    %cst_26 = arith.constant 0.000000e+00 : f32
    %40 = vector.broadcast %cst_26 : f32 to vector<1x32xf32>
    %41 = arith.maximumf %39, %40 : vector<1x32xf32>
    %42 = vector.broadcast %35 : vector<1x32xf32> to vector<2x32xf32>
    %43 = arith.subf %28, %42 : vector<2x32xf32>
    %cst_27 = arith.constant 9.99999974E-6 : f32
    %44 = vector.broadcast %cst_27 : f32 to vector<1x32xf32>
    %45 = arith.addf %41, %44 : vector<1x32xf32>
    %46 = math.rsqrt %45 : vector<1x32xf32>
    %47 = vector.broadcast %46 : vector<1x32xf32> to vector<2x32xf32>
    %48 = arith.mulf %43, %47 : vector<2x32xf32>
    %49 = vector.broadcast %22 : vector<1x32xf32> to vector<2x32xf32>
    %50 = arith.mulf %48, %49 : vector<2x32xf32>
    %51 = vector.broadcast %23 : vector<1x32xf32> to vector<2x32xf32>
    %52 = arith.addf %50, %51 : vector<2x32xf32>
    %cst_28 = arith.constant 0.000000e+00 : f32
    %53 = vector.broadcast %cst_28 : f32 to vector<2x32xf32>
    %54 = arith.maximumf %52, %53 : vector<2x32xf32>
    %55 = arith.truncf %54 : vector<2x32xf32> to vector<2x32xbf16>
    %56 = arith.truncf %24 : vector<32x16xf32> to vector<32x16xbf16>
    %cst_29 = arith.constant dense<0.000000e+00> : vector<2x16xf32>
    %57 = tpu.matmul %55, %56, %cst_29 {dimension_numbers = #tpu.dot_dimension_numbers<[1], [0], [0], [1], [0, 0, 1, 1], [], []>} : vector<2x32xbf16>, vector<32x16xbf16>, vector<2x16xf32> -> vector<2x16xf32>
    %58 = vector.broadcast %25 : vector<1x16xf32> to vector<2x16xf32>
    %59 = arith.addf %57, %58 : vector<2x16xf32>
    %c0_30 = arith.constant 0 : index
    %c0_31 = arith.constant 0 : index
    %60 = vector.load %arg9[%c0_30, %c0_31] : memref<16x32xf32, #tpu.memory_space<vmem>>, vector<16x32xf32>
    %c0_32 = arith.constant 0 : index
    %c0_33 = arith.constant 0 : index
    %61 = vector.load %arg10[%c0_32, %c0_33] : memref<1x32xf32, #tpu.memory_space<vmem>>, vector<1x32xf32>
    %c0_34 = arith.constant 0 : index
    %c0_35 = arith.constant 0 : index
    %62 = vector.load %arg11[%c0_34, %c0_35] : memref<1x32xf32, #tpu.memory_space<vmem>>, vector<1x32xf32>
    %c0_36 = arith.constant 0 : index
    %c0_37 = arith.constant 0 : index
    %63 = vector.load %arg12[%c0_36, %c0_37] : memref<32x16xf32, #tpu.memory_space<vmem>>, vector<32x16xf32>
    %c0_38 = arith.constant 0 : index
    %c0_39 = arith.constant 0 : index
    %64 = vector.load %arg13[%c0_38, %c0_39] : memref<1x16xf32, #tpu.memory_space<vmem>>, vector<1x16xf32>
    %65 = arith.truncf %59 : vector<2x16xf32> to vector<2x16xbf16>
    %66 = arith.truncf %60 : vector<16x32xf32> to vector<16x32xbf16>
    %cst_40 = arith.constant dense<0.000000e+00> : vector<2x32xf32>
    %67 = tpu.matmul %65, %66, %cst_40 {dimension_numbers = #tpu.dot_dimension_numbers<[1], [0], [0], [1], [0, 0, 1, 1], [], []>} : vector<2x16xbf16>, vector<16x32xbf16>, vector<2x32xf32> -> vector<2x32xf32>
    %cst_41 = arith.constant dense<0.000000e+00> : vector<32xf32>
    %68 = vector.multi_reduction <add>, %67, %cst_41 [0] : vector<2x32xf32> to vector<32xf32>
    %69 = vector.shape_cast %68 : vector<32xf32> to vector<1x32xf32>
    %70 = arith.mulf %67, %67 : vector<2x32xf32>
    %cst_42 = arith.constant dense<0.000000e+00> : vector<32xf32>
    %71 = vector.multi_reduction <add>, %70, %cst_42 [0] : vector<2x32xf32> to vector<32xf32>
    %72 = vector.shape_cast %71 : vector<32xf32> to vector<1x32xf32>
    %cst_43 = arith.constant 5.000000e-01 : f32
    %73 = vector.broadcast %cst_43 : f32 to vector<1x32xf32>
    %74 = arith.mulf %69, %73 : vector<1x32xf32>
    %cst_44 = arith.constant 5.000000e-01 : f32
    %75 = vector.broadcast %cst_44 : f32 to vector<1x32xf32>
    %76 = arith.mulf %72, %75 : vector<1x32xf32>
    %77 = arith.mulf %74, %74 : vector<1x32xf32>
    %78 = arith.subf %76, %77 : vector<1x32xf32>
    %cst_45 = arith.constant 0.000000e+00 : f32
    %79 = vector.broadcast %cst_45 : f32 to vector<1x32xf32>
    %80 = arith.maximumf %78, %79 : vector<1x32xf32>
    %81 = vector.broadcast %74 : vector<1x32xf32> to vector<2x32xf32>
    %82 = arith.subf %67, %81 : vector<2x32xf32>
    %cst_46 = arith.constant 9.99999974E-6 : f32
    %83 = vector.broadcast %cst_46 : f32 to vector<1x32xf32>
    %84 = arith.addf %80, %83 : vector<1x32xf32>
    %85 = math.rsqrt %84 : vector<1x32xf32>
    %86 = vector.broadcast %85 : vector<1x32xf32> to vector<2x32xf32>
    %87 = arith.mulf %82, %86 : vector<2x32xf32>
    %88 = vector.broadcast %61 : vector<1x32xf32> to vector<2x32xf32>
    %89 = arith.mulf %87, %88 : vector<2x32xf32>
    %90 = vector.broadcast %62 : vector<1x32xf32> to vector<2x32xf32>
    %91 = arith.addf %89, %90 : vector<2x32xf32>
    %cst_47 = arith.constant 0.000000e+00 : f32
    %92 = vector.broadcast %cst_47 : f32 to vector<2x32xf32>
    %93 = arith.maximumf %91, %92 : vector<2x32xf32>
    %94 = arith.truncf %93 : vector<2x32xf32> to vector<2x32xbf16>
    %95 = arith.truncf %63 : vector<32x16xf32> to vector<32x16xbf16>
    %cst_48 = arith.constant dense<0.000000e+00> : vector<2x16xf32>
    %96 = tpu.matmul %94, %95, %cst_48 {dimension_numbers = #tpu.dot_dimension_numbers<[1], [0], [0], [1], [0, 0, 1, 1], [], []>} : vector<2x32xbf16>, vector<32x16xbf16>, vector<2x16xf32> -> vector<2x16xf32>
    %97 = vector.broadcast %64 : vector<1x16xf32> to vector<2x16xf32>
    %98 = arith.addf %96, %97 : vector<2x16xf32>
    %c0_49 = arith.constant 0 : index
    %c0_50 = arith.constant 0 : index
    %c0_51 = arith.constant 0 : index
    %99 = vector.load %arg14[%c0_49, %c0_50, %c0_51] : memref<1x2x16xf32, #tpu.memory_space<vmem>>, vector<1x2x16xf32>
    %100 = vector.shape_cast %99 : vector<1x2x16xf32> to vector<2x16xf32>
    %101 = vector.shape_cast %98 : vector<2x16xf32> to vector<1x2x16xf32>
    tpu.vector_store %arg14[%c0_49, %c0_50, %c0_51], %101 {strides = array<i32>} : memref<1x2x16xf32, #tpu.memory_space<vmem>>, vector<1x2x16xf32>,
    return
  }
  func.func @transform_0(%arg0: i32) -> (i32, i32, i32) {
    %c0_i32 = arith.constant 0 : i32
    %c0_i32_0 = arith.constant 0 : i32
    %c0_i32_1 = arith.constant 0 : i32
    return %arg0, %c0_i32, %c0_i32_0 : i32, i32, i32
  }
  func.func @transform_1(%arg0: i32) -> (i32, i32) {
    %c0_i32 = arith.constant 0 : i32
    %c0_i32_0 = arith.constant 0 : i32
    %c0_i32_1 = arith.constant 0 : i32
    return %c0_i32, %c0_i32_0 : i32, i32
  }
  func.func @transform_2(%arg0: i32) -> (i32, i32) {
    %c0_i32 = arith.constant 0 : i32
    %c0_i32_0 = arith.constant 0 : i32
    %c0_i32_1 = arith.constant 0 : i32
    return %c0_i32, %c0_i32_0 : i32, i32
  }
  func.func @transform_3(%arg0: i32) -> (i32, i32) {
    %c0_i32 = arith.constant 0 : i32
    %c0_i32_0 = arith.constant 0 : i32
    %c0_i32_1 = arith.constant 0 : i32
    return %c0_i32, %c0_i32_0 : i32, i32
  }
  func.func @transform_4(%arg0: i32) -> (i32, i32) {
    %c0_i32 = arith.constant 0 : i32
    %c0_i32_0 = arith.constant 0 : i32
    %c0_i32_1 = arith.constant 0 : i32
    return %c0_i32, %c0_i32_0 : i32, i32
  }
  func.func @transform_5(%arg0: i32) -> (i32, i32) {
    %c0_i32 = arith.constant 0 : i32
    %c0_i32_0 = arith.constant 0 : i32
    %c0_i32_1 = arith.constant 0 : i32
    return %c0_i32, %c0_i32_0 : i32, i32
  }
  func.func @transform_6(%arg0: i32) -> (i32, i32) {
    %c0_i32 = arith.constant 0 : i32
    %c0_i32_0 = arith.constant 0 : i32
    %c0_i32_1 = arith.constant 0 : i32
    return %c0_i32, %c0_i32_0 : i32, i32
  }
  func.func @transform_7(%arg0: i32) -> (i32, i32) {
    %c0_i32 = arith.constant 0 : i32
    %c0_i32_0 = arith.constant 0 : i32
    %c0_i32_1 = arith.constant 0 : i32
    return %c0_i32, %c0_i32_0 : i32, i32
  }
  func.func @transform_8(%arg0: i32) -> (i32, i32) {
    %c0_i32 = arith.constant 0 : i32
    %c0_i32_0 = arith.constant 0 : i32
    %c0_i32_1 = arith.constant 0 : i32
    return %c0_i32, %c0_i32_0 : i32, i32
  }
  func.func @transform_9(%arg0: i32) -> (i32, i32) {
    %c0_i32 = arith.constant 0 : i32
    %c0_i32_0 = arith.constant 0 : i32
    %c0_i32_1 = arith.constant 0 : i32
    return %c0_i32, %c0_i32_0 : i32, i32
  }
  func.func @transform_10(%arg0: i32) -> (i32, i32) {
    %c0_i32 = arith.constant 0 : i32
    %c0_i32_0 = arith.constant 0 : i32
    %c0_i32_1 = arith.constant 0 : i32
    return %c0_i32, %c0_i32_0 : i32, i32
  }
  func.func @transform_11(%arg0: i32) -> (i32, i32) {
    %c0_i32 = arith.constant 0 : i32
    %c0_i32_0 = arith.constant 0 : i32
    %c0_i32_1 = arith.constant 0 : i32
    return %c0_i32, %c0_i32_0 : i32, i32
  }
  func.func @transform_12(%arg0: i32) -> (i32, i32) {
    %c0_i32 = arith.constant 0 : i32
    %c0_i32_0 = arith.constant 0 : i32
    %c0_i32_1 = arith.constant 0 : i32
    return %c0_i32, %c0_i32_0 : i32, i32
  }
  func.func @transform_13(%arg0: i32) -> (i32, i32, i32) {
    %c0_i32 = arith.constant 0 : i32
    %c0_i32_0 = arith.constant 0 : i32
    %c0_i32_1 = arith.constant 0 : i32
    return %arg0, %c0_i32, %c0_i32_0 : i32, i32, i32
  }
}

</mosaic_0001>

<bundles_post_ra>
// kernel: byol_forward.3
= control target key start
LH: loop header
LB: loop body
LE: loop exit
PB: predicated region body
PF: predicated region fallthrough
CT: control target
= control target key end

     0   :  { %s1661_s27 = smov 0   ;;  %s2027_s0 = inlined_call_operand.vmem [shape: bf16[2,512,36], index: 0, kind: input, shape index: {}]   ;;  %s2028_s1 = inlined_call_operand.vmem [shape: f32[36,32], index: 1, kind: input, shape index: {}]   ;;  %s2029_s2 = inlined_call_operand.vmem [shape: f32[1,32], index: 2, kind: input, shape index: {}]   ;;  %s2030_s3 = inlined_call_operand.vmem [shape: f32[32,32], index: 3, kind: input, shape index: {}]   ;;  %s2031_s4 = inlined_call_operand.vmem [shape: f32[1,32], index: 4, kind: input, shape index: {}]   ;;  %s2032_s5 = inlined_call_operand.vmem [shape: f32[1,32], index: 5, kind: input, shape index: {}]   ;;  %s2033_s6 = inlined_call_operand.vmem [shape: f32[32,16], index: 6, kind: input, shape index: {}]   ;;  %s2034_s7 = inlined_call_operand.vmem [shape: f32[1,16], index: 7, kind: input, shape index: {}]   ;;  %s2035_s8 = inlined_call_operand.vmem [shape: f32[2,2,16], index: 8, kind: output, shape index: {}]  }
   0x1 LB: > { %s1346_s28 = sadd.s32 4294967295, %s1612_s27   ;;  %p1350_p0 = scmp.ge.s32.totalorder %s1612_s27, 1  ;;  %s1612_s27 = sphi %s1661_s27, %s18_s27  }
   0x2   : > { %p262_p1 = scmp.lt.s32.totalorder %s1612_s27, 3 }
   0x4   : > { %p263_p2 = pnand %p1350_p0, %p262_p1 }
   0x5   : > { %v369_v0 = vld [vmem:[%s2028_s1] sm:$0xff] (!%p263_p2)  ;;  %v370_v1 = vld [vmem:[%s2028_s1 + $0x8] sm:$0xff] (!%p263_p2)  ;;  %v371_v2 = vld [vmem:[%s2028_s1 + $0x10] sm:$0xff] (!%p263_p2)  ;;  %p295_p3 = scmp.lt.s32.totalorder (!%p263_p2), %s1346_s28, 1  ;;  %vm544_vm0 = vcmask (!%p263_p2), 293888   ;;  %vm641_vm1 = vcmask (!%p263_p2), 1041408  }
   0x6   : > { %266 = sbr.rel (%p263_p2) target bundleno = 854 (0x356), region = 52  ;;  %v375_v3 = vpack.c.bf16 (!%p263_p2), %v370_v1, %v369_v0  ;;  %v372_v4 = vld [vmem:[%s2028_s1 + $0x18] sm:$0xff] (!%p263_p2)  ;;  %v373_v6 = vld [vmem:[%s2028_s1 + $0x20] sm:$0xf] (!%p263_p2)  ;;  %v1614_v41 = vmov (!%p263_p2), 0.0   ;;  %v1143_v43 = vld [vmem:[%s2030_s3 + $0x8] sm:$0xff] (!%p263_p2) }
   0x7   : > { %v376_v5 = vpack.c.bf16 (!%p263_p2), %v372_v4, %v371_v2  ;;  %v377_v7 = vpack.c.bf16 (!%p263_p2), %v373_v6, %v373_v6  ;;  %v1142_v42 = vld [vmem:[%s2030_s3] sm:$0xff] (!%p263_p2)  ;;  %vm998_vm2 = vcmask (!%p263_p2), 261120   ;;  %vm1615_vm3 = vmmov (!%p263_p2), 0  }
   0x8   : > { %1468 = vmatprep.subr.bf16.mxu0 (!%p263_p2), %v375_v3  ;;  %1554 = vmatprep.subr.bf16.mxu1 (!%p263_p2), %v375_v3  ;;  %v1154_v44 = vpack.c.bf16 (!%p263_p2), %v1143_v43, %v1142_v42  ;;  %v1767_v45 = vld [vmem:[%s2029_s2] ss:$0 sm:$0xff] (!%p263_p2)  ;;  %vm1140_vm4 = vcmask (!%p263_p2), 1040384   ;;  %vm1199_vm5 = vcmask (!%p263_p2), 254976   ;;  %vm1291_vm6 = vcmask (!%p263_p2), 123904  }
   0x9   : > { %1469 = vmatpush3.bf16.msra.mxu0 (!%p263_p2), %v375_v3  ;;  %1557 = vmatpush3.bf16.msra.mxu1 (!%p263_p2), %v375_v3  ;;  %v643_v9 = vsel (!%p263_p2), %vm641_vm1, %v377_v7, 0 }
   0xa   : > { %1470 = vmatprep.subr.bf16.mxu0 (!%p263_p2), %v376_v5  ;;  %1555 = vmatprep.subr.bf16.mxu1 (!%p263_p2), %v376_v5 }
   0xd   : > { %s2037_s28 = smov (!%p295_p3, %s1346_s28), 1  ;;  %1471 = vmatpush3.bf16.msra.mxu0 %v376_v5  ;;  %1558 = vmatpush3.bf16.msra.mxu1 %v376_v5 }
   0xe   : > { %s1426_s17 = sshll.u32 %s2037_s28, 8  ;;  %1560 = vmatprep.subr.msk.bf16.mxu0 %vm641_vm1, %v377_v7  ;;  %1561 = vmatprep.subr.msk.bf16.mxu1 %vm641_vm1, %v377_v7  ;;  %s1353_s23 = sshll.u32 %s2037_s28, 1 }
   0xf   : > { %s1690_s20 = scalar_lea.vmem %s2027_s0, %s1426_s17  ;;  %s303_s30 = scalar_lea.vmem %s2035_s8, %s1353_s23 }
  0x10   : > { %v1572_v8 = vld [vmem:[%s1690_s20] sm:$0xff]   ;;  %v1573_v10 = vld [vmem:[%s1690_s20 + $0x8] sm:$0xff]   ;;  %v1574_v11 = vld [vmem:[%s1690_s20 + $0x10] sm:$0xff]  }
  0x11   : > { %1474 = vmatprep.mubr.msk.bf16.mxu0 %vm544_vm0, %v1572_v8  ;;  %1473 = vmatpush3.bf16.msra.mxu0 %v643_v9  ;;  %v1575_v12 = vld [vmem:[%s1690_s20 + $0x18] sm:$0xff]   ;;  %v1576_v13 = vld [vmem:[%s1690_s20 + $0x20] sm:$0xff]   ;;  %v1590_v14 = vld [vmem:[%s1690_s20 + $0x90] sm:$0xff]  }
  0x12   : > { %1559 = vmatpush3.bf16.msra.mxu1 %v643_v9  ;;  %v1591_v15 = vld [vmem:[%s1690_s20 + $0x98] sm:$0xff]   ;;  %1510 = vmatprep.mubr.msk.bf16.mxu1 %vm544_vm0, %v1590_v14  ;;  %v1592_v16 = vld [vmem:[%s1690_s20 + $0xa0] sm:$0xff]   ;;  %v1577_v17 = vld [vmem:[%s1690_s20 + $0x28] sm:$0xff]  }
  0x13   : > { %v1578_v18 = vld [vmem:[%s1690_s20 + $0x30] sm:$0xff]   ;;  %v1593_v19 = vld [vmem:[%s1690_s20 + $0xa8] sm:$0xff]   ;;  %v1579_v21 = vld [vmem:[%s1690_s20 + $0x38] sm:$0xff]   ;;  %1538 = vmatprep.subr.bf16.mxu1 %v1614_v41 }
  0x14   : > { %1475 = vmatmul.mubr.msk.bf16.vlgmr.msra.gmra.mrb[0].mxu0 %vm544_vm0, %v1573_v10  ;;  %v1594_v20 = vld [vmem:[%s1690_s20 + $0xb0] sm:$0xff]   ;;  %v1580_v22 = vld [vmem:[%s1690_s20 + $0x40] sm:$0xff]   ;;  %v1595_v23 = vld [vmem:[%s1690_s20 + $0xb8] sm:$0xff]  }
  0x15   : > { %1478 = vmatprep.mubr.msk.bf16.mxu0 %vm544_vm0, %v1574_v11  ;;  %1511 = vmatmul.mubr.msk.bf16.vlgmr.msra.gmra.mrb[0].mxu1 %vm544_vm0, %v1591_v15  ;;  %v1596_v24 = vld [vmem:[%s1690_s20 + $0xc0] sm:$0xff]   ;;  %v1581_v25 = vld [vmem:[%s1690_s20 + $0x48] sm:$0xff]   ;;  %v1582_v26 = vld [vmem:[%s1690_s20 + $0x50] sm:$0xff]  }
  0x16   : > { %1514 = vmatprep.mubr.msk.bf16.mxu1 %vm544_vm0, %v1592_v16  ;;  %v1597_v27 = vld [vmem:[%s1690_s20 + $0xc8] sm:$0xff]   ;;  %v1598_v28 = vld [vmem:[%s1690_s20 + $0xd0] sm:$0xff]   ;;  %v1583_v29 = vld [vmem:[%s1690_s20 + $0x58] sm:$0xff]   ;;  %1539 = vmatpush3.bf16.msra.mxu1 %v1154_v44 }
  0x17   : > { %v1584_v30 = vld [vmem:[%s1690_s20 + $0x60] sm:$0xff]   ;;  %v1599_v31 = vld [vmem:[%s1690_s20 + $0xd8] sm:$0xff]   ;;  %v1585_v33 = vld [vmem:[%s1690_s20 + $0x68] sm:$0xff]   ;;  %1540 = vmatprep.subr.bf16.mxu1 %v1614_v41 }
  0x18   : > { %v1600_v32 = vld [vmem:[%s1690_s20 + $0xe0] sm:$0xff]   ;;  %v1586_v34 = vld [vmem:[%s1690_s20 + $0x70] sm:$0xff]   ;;  %v1601_v35 = vld [vmem:[%s1690_s20 + $0xe8] sm:$0xff]  }
  0x19   : > { %v1602_v36 = vld [vmem:[%s1690_s20 + $0xf0] sm:$0xff]   ;;  %v1587_v37 = vld [vmem:[%s1690_s20 + $0x78] sm:$0xff]   ;;  %v1588_v38 = vld [vmem:[%s1690_s20 + $0x80] sm:$0xff]  }
  0x1a   : > { %v1603_v39 = vld [vmem:[%s1690_s20 + $0xf8] sm:$0xff]   ;;  %v1589_v40 = vld [vmem:[%s1690_s20 + $0x88] sm:$0xff]  }
  0x1c   : > { %1479 = vmatmul.mubr.msk.bf16.gmra.mrb[4].mxu0 %vm544_vm0, %v1575_v12 }
  0x1d   : > { %1482 = vmatprep.mubr.msk.bf16.mxu0 %vm544_vm0, %v1576_v13  ;;  %1515 = vmatmul.mubr.msk.bf16.gmra.mrb[4].mxu1 %vm544_vm0, %v1593_v19 }
  0x1e   : > { %1518 = vmatprep.mubr.msk.bf16.mxu1 %vm544_vm0, %v1594_v20 }
  0x24   : > { %1483 = vmatmul.mubr.msk.bf16.gmra.mrb[8].mxu0 %vm544_vm0, %v1577_v17 }
  0x25   : > { %1486 = vmatprep.mubr.msk.bf16.mxu0 %vm544_vm0, %v1578_v18  ;;  %1519 = vmatmul.mubr.msk.bf16.gmra.mrb[8].mxu1 %vm544_vm0, %v1595_v23 }
  0x26   : > { %1522 = vmatprep.mubr.msk.bf16.mxu1 %vm544_vm0, %v1596_v24 }
  0x2c   : > { %1487 = vmatmul.mubr.msk.bf16.gmra.mrb[12].mxu0 %vm544_vm0, %v1579_v21 }
  0x2d   : > { %1490 = vmatprep.mubr.msk.bf16.mxu0 %vm544_vm0, %v1580_v22  ;;  %1523 = vmatmul.mubr.msk.bf16.gmra.mrb[12].mxu1 %vm544_vm0, %v1597_v27  ;;  %v1144_v27 = vld [vmem:[%s2030_s3 + $0x10] sm:$0xff] }
  0x2e   : > { %1526 = vmatprep.mubr.msk.bf16.mxu1 %vm544_vm0, %v1598_v28  ;;  %v1145_v28 = vld [vmem:[%s2030_s3 + $0x18] sm:$0xff] }
  0x34   : > { %1491 = vmatmul.mubr.msk.bf16.gmra.mrb[16].mxu0 %vm544_vm0, %v1581_v25 }
  0x35   : > { %1494 = vmatprep.mubr.msk.bf16.mxu0 %vm544_vm0, %v1582_v26  ;;  %1527 = vmatmul.mubr.msk.bf16.gmra.mrb[16].mxu1 %vm544_vm0, %v1599_v31 }
  0x36   : > { %1530 = vmatprep.mubr.msk.bf16.mxu1 %vm544_vm0, %v1600_v32 }
  0x3c   : > { %1495 = vmatmul.mubr.msk.bf16.gmra.mrb[20].mxu0 %vm544_vm0, %v1583_v29 }
  0x3d   : > { %1498 = vmatprep.mubr.msk.bf16.mxu0 %vm544_vm0, %v1584_v30  ;;  %1531 = vmatmul.mubr.msk.bf16.gmra.mrb[20].mxu1 %vm544_vm0, %v1601_v35 }
  0x3e   : > { %1534 = vmatprep.mubr.msk.bf16.mxu1 %vm544_vm0, %v1602_v36  ;;  %v1155_v36 = vpack.c.bf16 %v1145_v28, %v1144_v27 }
  0x40   : > { %1541 = vmatpush3.bf16.msra.mxu1 %v1155_v36 }
  0x41   : > { %1546 = vmatprep.subr.bf16.mxu1 %v1614_v41 }
  0x44   : > { %1499 = vmatmul.mubr.msk.bf16.gmra.mrb[24].mxu0 %vm544_vm0, %v1585_v33 }
  0x45   : > { %1502 = vmatprep.mubr.msk.bf16.mxu0 %vm544_vm0, %v1586_v34  ;;  %1535 = vmatmul.mubr.msk.bf16.gmra.mrb[24].mxu1 %vm544_vm0, %v1603_v39 }
  0x46   : > { %1542 = vmatprep.mubr.msk.bf16.mxu1 %vm1615_vm3, %v1614_v41 }
  0x4c   : > { %1503 = vmatmul.mubr.msk.bf16.gmra.mrb[28].mxu0 %vm544_vm0, %v1587_v37 }
  0x4d   : > { %1506 = vmatprep.mubr.msk.bf16.mxu0 %vm544_vm0, %v1588_v38 }
  0x54   : > { %1507 = vmatmul.mubr.msk.bf16.gmra.mrb[32].mxu0 %vm544_vm0, %v1589_v40 }
  0xe7   : > { %v1476_v46 = vpop.f32.mrb[0].mxu0 }
  0xe8   : > { %v679_v47 = vpop.f32.mrb[1].mxu0  ;;  %v688_v48 = vadd.f32 %v1476_v46, %v1767_v45  ;;  %v1781_v9 = vpop.f32.mrb[0].mxu1 }
  0xe9   : > { %v680_v49 = vadd.f32 %v1767_v45, %v679_v47  ;;  %v1477_v50 = vpop.f32.mrb[2].mxu0  ;;  %v1783_v11 = vpop.f32.mrb[1].mxu1 }
  0xea   : > { %v682_v51 = vpop.f32.mrb[3].mxu0  ;;  %v691_v53 = vadd.f32 %v1477_v50, %v1767_v45  ;;  %v936_v55 = vmax.f32 %v688_v48, 0.0  ;;  %v1786_v15 = vpop.f32.mrb[2].mxu1 }
  0xeb   : > { %v934_v52 = vmax.f32 %v680_v49, 0.0  ;;  %v683_v54 = vadd.f32 %v1767_v45, %v682_v51  ;;  %v1788_v18 = vpop.f32.mrb[3].mxu1 }
  0xec   : > { %v937_v58 = vmax.f32 %v691_v53, 0.0  ;;  %v1002_v63 = vsel %vm998_vm2, %v936_v55, 0.0 }
  0xed   : > { %v935_v56 = vmax.f32 %v683_v54, 0.0  ;;  %v999_v57 = vsel %vm998_vm2, %v934_v52, 0.0 }
  0xee   : > { %v1004_v6 = vsel %vm998_vm2, %v937_v58, 0.0 }
  0xef   : > { %v1000_v59 = vsel %vm998_vm2, %v935_v56, 0.0  ;;  %v1480_v60 = vpop.f32.mrb[4].mxu0 }
  0xf0   : > { %v1001_v61 = vadd.f32 %v1000_v59, %v999_v57  ;;  %v695_v62 = vpop.f32.mrb[5].mxu0  ;;  %v704_v0 = vadd.f32 %v1480_v60, %v1767_v45  ;;  %v1803_v35 = vpop.f32.mrb[4].mxu1 }
  0xf1   : > { %v696_v1 = vadd.f32 %v1767_v45, %v695_v62  ;;  %v1481_v2 = vpop.f32.mrb[6].mxu0  ;;  %v1805_v38 = vpop.f32.mrb[5].mxu1 }
  0xf2   : > { %v1003_v3 = vadd.f32 %v1002_v63, %v1001_v61  ;;  %v707_v4 = vadd.f32 %v1481_v2, %v1767_v45  ;;  %v698_v5 = vpop.f32.mrb[7].mxu0  ;;  %v940_v12 = vmax.f32 %v704_v0, 0.0  ;;  %v1808_v43 = vpop.f32.mrb[6].mxu1 }
  0xf3   : > { %v938_v7 = vmax.f32 %v696_v1, 0.0  ;;  %v699_v8 = vadd.f32 %v1767_v45, %v698_v5  ;;  %v1810_v46 = vpop.f32.mrb[7].mxu1 }
  0xf4   : > { %v1005_v10 = vadd.f32 %v1004_v6, %v1003_v3  ;;  %v941_v17 = vmax.f32 %v707_v4, 0.0  ;;  %v1010_v23 = vsel %vm998_vm2, %v940_v12, 0.0 }
  0xf5   : > { %v1006_v13 = vsel %vm998_vm2, %v938_v7, 0.0  ;;  %v939_v14 = vmax.f32 %v699_v8, 0.0 }
  0xf6   : > { %v1007_v16 = vadd.f32 %v1006_v13, %v1005_v10  ;;  %v1012_v29 = vsel %vm998_vm2, %v941_v17, 0.0 }
  0xf7   : > { %v1008_v19 = vsel %vm998_vm2, %v939_v14, 0.0  ;;  %v1484_v20 = vpop.f32.mrb[8].mxu0 }
  0xf8   : > { %v1009_v21 = vadd.f32 %v1008_v19, %v1007_v16  ;;  %v711_v22 = vpop.f32.mrb[9].mxu0  ;;  %v720_v24 = vadd.f32 %v1484_v20, %v1767_v45  ;;  %v1822_v62 = vpop.f32.mrb[8].mxu1 }
  0xf9   : > { %v712_v25 = vadd.f32 %v1767_v45, %v711_v22  ;;  %v1485_v26 = vpop.f32.mrb[10].mxu0  ;;  %v1824_v0 = vpop.f32.mrb[9].mxu1 }
  0xfa   : > { %v1011_v30 = vadd.f32 %v1010_v23, %v1009_v21  ;;  %v714_v31 = vpop.f32.mrb[11].mxu0  ;;  %v723_v33 = vadd.f32 %v1485_v26, %v1767_v45  ;;  %v944_v39 = vmax.f32 %v720_v24, 0.0  ;;  %v1827_v4 = vpop.f32.mrb[10].mxu1 }
  0xfb   : > { %v942_v32 = vmax.f32 %v712_v25, 0.0  ;;  %v715_v34 = vadd.f32 %v1767_v45, %v714_v31  ;;  %v1829_v6 = vpop.f32.mrb[11].mxu1 }
  0xfc   : > { %v1013_v37 = vadd.f32 %v1012_v29, %v1011_v30  ;;  %v945_v47 = vmax.f32 %v723_v33, 0.0  ;;  %v1018_v52 = vsel %vm998_vm2, %v944_v39, 0.0 }
  0xfd   : > { %v1014_v40 = vsel %vm998_vm2, %v942_v32, 0.0  ;;  %v943_v42 = vmax.f32 %v715_v34, 0.0 }
  0xfe   : > { %v1015_v44 = vadd.f32 %v1014_v40, %v1013_v37  ;;  %v1020_v58 = vsel %vm998_vm2, %v945_v47, 0.0 }
  0xff   : > { %v1016_v48 = vsel %vm998_vm2, %v943_v42, 0.0  ;;  %v1488_v49 = vpop.f32.mrb[12].mxu0 }
 0x100   : > { %v1017_v50 = vadd.f32 %v1016_v48, %v1015_v44  ;;  %v727_v51 = vpop.f32.mrb[13].mxu0  ;;  %v736_v53 = vadd.f32 %v1488_v49, %v1767_v45  ;;  %v1838_v26 = vpop.f32.mrb[12].mxu1 }
 0x101   : > { %v728_v54 = vadd.f32 %v1767_v45, %v727_v51  ;;  %v1489_v55 = vpop.f32.mrb[14].mxu0  ;;  %v1840_v28 = vpop.f32.mrb[13].mxu1 }
 0x102   : > { %v1019_v56 = vadd.f32 %v1018_v52, %v1017_v50  ;;  %v730_v57 = vpop.f32.mrb[15].mxu0  ;;  %v739_v60 = vadd.f32 %v1489_v55, %v1767_v45  ;;  %v948_v1 = vmax.f32 %v736_v53, 0.0  ;;  %v1843_v32 = vpop.f32.mrb[14].mxu1 }
 0x103   : > { %v946_v59 = vmax.f32 %v728_v54, 0.0  ;;  %v731_v61 = vadd.f32 %v1767_v45, %v730_v57  ;;  %v1845_v34 = vpop.f32.mrb[15].mxu1 }
 0x104   : > { %v1021_v63 = vadd.f32 %v1020_v58, %v1019_v56  ;;  %v949_v7 = vmax.f32 %v739_v60, 0.0  ;;  %v1026_v14 = vsel %vm998_vm2, %v948_v1, 0.0 }
 0x105   : > { %v1022_v2 = vsel %vm998_vm2, %v946_v59, 0.0  ;;  %v947_v3 = vmax.f32 %v731_v61, 0.0 }
 0x106   : > { %v1023_v5 = vadd.f32 %v1022_v2, %v1021_v63  ;;  %v1028_v22 = vsel %vm998_vm2, %v949_v7, 0.0 }
 0x107   : > { %v1024_v8 = vsel %vm998_vm2, %v947_v3, 0.0  ;;  %v1492_v10 = vpop.f32.mrb[16].mxu0 }
 0x108   : > { %v1025_v12 = vadd.f32 %v1024_v8, %v1023_v5  ;;  %v743_v13 = vpop.f32.mrb[17].mxu0  ;;  %v752_v16 = vadd.f32 %v1492_v10, %v1767_v45  ;;  %v1854_v56 = vpop.f32.mrb[16].mxu1 }
 0x109   : > { %v744_v17 = vadd.f32 %v1767_v45, %v743_v13  ;;  %v1493_v19 = vpop.f32.mrb[18].mxu0  ;;  %v1856_v58 = vpop.f32.mrb[17].mxu1 }
 0x10a   : > { %v1027_v20 = vadd.f32 %v1026_v14, %v1025_v12  ;;  %v746_v21 = vpop.f32.mrb[19].mxu0  ;;  %v755_v24 = vadd.f32 %v1493_v19, %v1767_v45  ;;  %v952_v29 = vmax.f32 %v752_v16, 0.0  ;;  %v1859_v63 = vpop.f32.mrb[18].mxu1 }
 0x10b   : > { %v950_v23 = vmax.f32 %v744_v17, 0.0  ;;  %v747_v25 = vadd.f32 %v1767_v45, %v746_v21  ;;  %v1861_v2 = vpop.f32.mrb[19].mxu1 }
 0x10c   : > { %v1029_v27 = vadd.f32 %v1028_v22, %v1027_v20  ;;  %v953_v36 = vmax.f32 %v755_v24, 0.0  ;;  %v1034_v44 = vsel %vm998_vm2, %v952_v29, 0.0 }
 0x10d   : > { %v1030_v30 = vsel %vm998_vm2, %v950_v23, 0.0  ;;  %v951_v31 = vmax.f32 %v747_v25, 0.0 }
 0x10e   : > { %v1031_v33 = vadd.f32 %v1030_v30, %v1029_v27  ;;  %v1036_v52 = vsel %vm998_vm2, %v953_v36, 0.0 }
 0x10f   : > { %v1032_v37 = vsel %vm998_vm2, %v951_v31, 0.0  ;;  %v1496_v39 = vpop.f32.mrb[20].mxu0 }
 0x110   : > { %v1033_v40 = vadd.f32 %v1032_v37, %v1031_v33  ;;  %v759_v42 = vpop.f32.mrb[21].mxu0  ;;  %v768_v47 = vadd.f32 %v1496_v39, %v1767_v45  ;;  %v1870_v24 = vpop.f32.mrb[20].mxu1 }
 0x111   : > { %v760_v48 = vadd.f32 %v1767_v45, %v759_v42  ;;  %v1497_v49 = vpop.f32.mrb[22].mxu0  ;;  %v1872_v27 = vpop.f32.mrb[21].mxu1 }
 0x112   : > { %v1035_v50 = vadd.f32 %v1034_v44, %v1033_v40  ;;  %v762_v51 = vpop.f32.mrb[23].mxu0  ;;  %v771_v54 = vadd.f32 %v1497_v49, %v1767_v45  ;;  %v956_v59 = vmax.f32 %v768_v47, 0.0  ;;  %v1875_v33 = vpop.f32.mrb[22].mxu1 }
 0x113   : > { %v954_v53 = vmax.f32 %v760_v48, 0.0  ;;  %v763_v55 = vadd.f32 %v1767_v45, %v762_v51  ;;  %v1877_v37 = vpop.f32.mrb[23].mxu1 }
 0x114   : > { %v1037_v57 = vadd.f32 %v1036_v52, %v1035_v50  ;;  %v957_v3 = vmax.f32 %v771_v54, 0.0  ;;  %v1042_v12 = vsel %vm998_vm2, %v956_v59, 0.0 }
 0x115   : > { %v1038_v60 = vsel %vm998_vm2, %v954_v53, 0.0  ;;  %v955_v61 = vmax.f32 %v763_v55, 0.0 }
 0x116   : > { %v1039_v1 = vadd.f32 %v1038_v60, %v1037_v57  ;;  %v1044_v20 = vsel %vm998_vm2, %v957_v3, 0.0 }
 0x117   : > { %v1040_v5 = vsel %vm998_vm2, %v955_v61, 0.0  ;;  %v1500_v7 = vpop.f32.mrb[24].mxu0 }
 0x118   : > { %v1041_v8 = vadd.f32 %v1040_v5, %v1039_v1  ;;  %v775_v10 = vpop.f32.mrb[25].mxu0  ;;  %v784_v13 = vadd.f32 %v1500_v7, %v1767_v45  ;;  %v1886_v60 = vpop.f32.mrb[24].mxu1 }
 0x119   : > { %v776_v14 = vadd.f32 %v1767_v45, %v775_v10  ;;  %v1501_v16 = vpop.f32.mrb[26].mxu0  ;;  %v1888_v1 = vpop.f32.mrb[25].mxu1 }
 0x11a   : > { %v1043_v17 = vadd.f32 %v1042_v12, %v1041_v8  ;;  %v778_v19 = vpop.f32.mrb[27].mxu0  ;;  %v787_v22 = vadd.f32 %v1501_v16, %v1767_v45  ;;  %v960_v29 = vmax.f32 %v784_v13, 0.0  ;;  %v1891_v8 = vpop.f32.mrb[26].mxu1 }
 0x11b   : > { %v958_v21 = vmax.f32 %v776_v14, 0.0  ;;  %v779_v23 = vadd.f32 %v1767_v45, %v778_v19  ;;  %v1893_v12 = vpop.f32.mrb[27].mxu1 }
 0x11c   : > { %v1045_v25 = vadd.f32 %v1044_v20, %v1043_v17  ;;  %v961_v39 = vmax.f32 %v787_v22, 0.0  ;;  %v1050_v48 = vsel %vm998_vm2, %v960_v29, 0.0 }
 0x11d   : > { %v1046_v30 = vsel %vm998_vm2, %v958_v21, 0.0  ;;  %v959_v31 = vmax.f32 %v779_v23, 0.0 }
 0x11e   : > { %v1047_v36 = vadd.f32 %v1046_v30, %v1045_v25  ;;  %v1052_v54 = vsel %vm998_vm2, %v961_v39, 0.0  ;;  %v824_v30 = vadd.f32 %v1767_v45, %v1783_v11  ;;  %v827_v11 = vadd.f32 %v1767_v45, %v1788_v18 }
 0x11f   : > { %v1048_v40 = vsel %vm998_vm2, %v959_v31, 0.0  ;;  %v1504_v42 = vpop.f32.mrb[28].mxu0 }
 0x120   : > { %v1049_v44 = vadd.f32 %v1048_v40, %v1047_v36  ;;  %v791_v47 = vpop.f32.mrb[29].mxu0  ;;  %v800_v49 = vadd.f32 %v1504_v42, %v1767_v45 }
 0x121   : > { %v792_v50 = vadd.f32 %v1767_v45, %v791_v47  ;;  %v1505_v51 = vpop.f32.mrb[30].mxu0 }
 0x122   : > { %v1051_v52 = vadd.f32 %v1050_v48, %v1049_v44  ;;  %v794_v53 = vpop.f32.mrb[31].mxu0  ;;  %v803_v57 = vadd.f32 %v1505_v51, %v1767_v45  ;;  %v964_v3 = vmax.f32 %v800_v49, 0.0  ;;  %v970_v48 = vmax.f32 %v824_v30, 0.0 }
 0x123   : > { %v962_v55 = vmax.f32 %v792_v50, 0.0  ;;  %v795_v59 = vadd.f32 %v1767_v45, %v794_v53 }
 0x124   : > { %v1053_v61 = vadd.f32 %v1052_v54, %v1051_v52  ;;  %v965_v13 = vmax.f32 %v803_v57, 0.0  ;;  %v1058_v20 = vsel %vm998_vm2, %v964_v3, 0.0  ;;  %v832_v54 = vadd.f32 %v1781_v9, %v1767_v45 }
 0x125   : > { %v1054_v5 = vsel %vm998_vm2, %v962_v55, 0.0  ;;  %v963_v7 = vmax.f32 %v795_v59, 0.0  ;;  %v835_v57 = vadd.f32 %v1786_v15, %v1767_v45  ;;  %v971_v3 = vmax.f32 %v827_v11, 0.0 }
 0x126   : > { %v1055_v10 = vadd.f32 %v1054_v5, %v1053_v61  ;;  %v1060_v31 = vsel %vm998_vm2, %v965_v13, 0.0  ;;  %v1077_v61 = vsel %vm998_vm2, %v970_v48, 0.0  ;;  %v840_v5 = vadd.f32 %v1767_v45, %v1805_v38 }
 0x127   : > { %v1056_v14 = vsel %vm998_vm2, %v963_v7, 0.0  ;;  %v1508_v16 = vpop.f32.mrb[32].mxu0  ;;  %v972_v18 = vmax.f32 %v832_v54, 0.0  ;;  %v973_v13 = vmax.f32 %v835_v57, 0.0  ;;  %v843_v9 = vadd.f32 %v1767_v45, %v1810_v46 }
 0x128   : > { %v1057_v17 = vadd.f32 %v1056_v14, %v1055_v10  ;;  %v807_v19 = vpop.f32.mrb[33].mxu0  ;;  %v816_v21 = vadd.f32 %v1508_v16, %v1767_v45  ;;  %v1079_v14 = vsel %vm998_vm2, %v971_v3, 0.0  ;;  %v974_v16 = vmax.f32 %v840_v5, 0.0 }
 0x129   : > { %v808_v22 = vadd.f32 %v1767_v45, %v807_v19  ;;  %v1509_v23 = vpop.f32.mrb[34].mxu0  ;;  %v1081_v15 = vsel %vm998_vm2, %v972_v18, 0.0  ;;  %v848_v19 = vadd.f32 %v1803_v35, %v1767_v45  ;;  %v859_v35 = vadd.f32 %v1767_v45, %v1829_v6 }
 0x12a   : > { %v1059_v25 = vadd.f32 %v1058_v20, %v1057_v17  ;;  %v810_v29 = vpop.f32.mrb[35].mxu0  ;;  %v819_v39 = vadd.f32 %v1509_v23, %v1767_v45  ;;  %v968_v44 = vmax.f32 %v816_v21, 0.0  ;;  %v1083_v20 = vsel %vm998_vm2, %v973_v13, 0.0 }
 0x12b   : > { %v966_v36 = vmax.f32 %v808_v22, 0.0  ;;  %v811_v40 = vadd.f32 %v1767_v45, %v810_v29  ;;  %v1085_v38 = vsel %vm998_vm2, %v974_v16, 0.0  ;;  %v851_v22 = vadd.f32 %v1808_v43, %v1767_v45 }
 0x12c   : > { %v1904_v42 = vadd.f32 %v1060_v31, %v1059_v25  ;;  %v969_v50 = vmax.f32 %v819_v39, 0.0  ;;  %v1073_v53 = vsel %vm998_vm2, %v968_v44, 0.0  ;;  %v975_v23 = vmax.f32 %v843_v9, 0.0 }
 0x12d   : > { %v967_v47 = vmax.f32 %v811_v40, 0.0  ;;  %v1070_v49 = vsel %vm998_vm2, %v966_v36, 0.0  ;;  %v856_v25 = vadd.f32 %v1767_v45, %v1824_v0  ;;  %v976_v46 = vmax.f32 %v848_v19, 0.0 }
 0x12e   : > { %v1075_v59 = vsel %vm998_vm2, %v969_v50, 0.0  ;;  %v977_v31 = vmax.f32 %v851_v22, 0.0  ;;  %v1087_v36 = vsel %vm998_vm2, %v975_v23, 0.0  ;;  %v864_v43 = vadd.f32 %v1822_v62, %v1767_v45 }
 0x12f   : > { %v1071_v51 = vsel %vm998_vm2, %v967_v47, 0.0  ;;  %v978_v39 = vmax.f32 %v856_v25, 0.0  ;;  %v1089_v44 = vsel %vm998_vm2, %v976_v46, 0.0  ;;  %v867_v0 = vadd.f32 %v1827_v4, %v1767_v45 }
 0x130   : > { %v1072_v52 = vadd.f32 %v1071_v51, %v1070_v49  ;;  %v1091_v48 = vsel %vm998_vm2, %v977_v31, 0.0  ;;  %v979_v50 = vmax.f32 %v859_v35, 0.0  ;;  %v872_v51 = vadd.f32 %v1767_v45, %v1840_v28 }
 0x131   : > { %v1093_v49 = vsel %vm998_vm2, %v978_v39, 0.0  ;;  %v980_v6 = vmax.f32 %v864_v43, 0.0  ;;  %v875_v62 = vadd.f32 %v1767_v45, %v1845_v34  ;;  %v883_v5 = vadd.f32 %v1843_v32, %v1767_v45 }
 0x132   : > { %v1074_v55 = vadd.f32 %v1073_v53, %v1072_v52  ;;  %v981_v53 = vmax.f32 %v867_v0, 0.0  ;;  %v1095_v54 = vsel %vm998_vm2, %v979_v50, 0.0  ;;  %v888_v18 = vadd.f32 %v1767_v45, %v1856_v58 }
 0x133   : > { %v1097_v4 = vsel %vm998_vm2, %v980_v6, 0.0  ;;  %v896_v32 = vadd.f32 %v1854_v56, %v1767_v45  ;;  %v899_v58 = vadd.f32 %v1859_v63, %v1767_v45  ;;  %v904_v22 = vadd.f32 %v1767_v45, %v1872_v27 }
 0x134   : > { %v1076_v7 = vadd.f32 %v1075_v59, %v1074_v55  ;;  %v982_v55 = vmax.f32 %v872_v51, 0.0  ;;  %v880_v59 = vadd.f32 %v1838_v26, %v1767_v45  ;;  %v986_v9 = vmax.f32 %v888_v18, 0.0 }
 0x135   : > { %v891_v26 = vadd.f32 %v1767_v45, %v1861_v2  ;;  %v988_v2 = vmax.f32 %v896_v32, 0.0  ;;  %v907_v56 = vadd.f32 %v1767_v45, %v1877_v37  ;;  %v920_v43 = vadd.f32 %v1767_v45, %v1888_v1 }
 0x136   : > { %v1078_v10 = vadd.f32 %v1077_v61, %v1076_v7  ;;  %v1099_v61 = vsel %vm998_vm2, %v981_v53, 0.0  ;;  %v1101_v28 = vsel %vm998_vm2, %v982_v55, 0.0  ;;  %v983_v7 = vmax.f32 %v875_v62, 0.0 }
 0x137   : > { %v984_v34 = vmax.f32 %v880_v59, 0.0  ;;  %v1113_v63 = vsel %vm998_vm2, %v988_v2, 0.0  ;;  %v994_v50 = vmax.f32 %v920_v43, 0.0  ;;  %v1062_v6 = vrot.slane %v1904_v42, 4 }
 0x138   : > { %v1080_v17 = vadd.f32 %v1079_v14, %v1078_v10  ;;  %v985_v14 = vmax.f32 %v883_v5, 0.0  ;;  %v1103_v16 = vsel %vm998_vm2, %v983_v7, 0.0 }
 0x139   : > { %v1125_v53 = vsel %vm998_vm2, %v994_v50, 0.0 }
 0x13a   : > { %v1082_v21 = vadd.f32 %v1081_v15, %v1080_v17  ;;  %v1105_v15 = vsel %vm998_vm2, %v984_v34, 0.0 }
 0x13c   : > { %v1084_v29 = vadd.f32 %v1083_v20, %v1082_v21  ;;  %v1107_v20 = vsel %vm998_vm2, %v985_v14, 0.0  ;;  %v1109_v21 = vsel %vm998_vm2, %v986_v9, 0.0 }
 0x13e   : > { %v1086_v30 = vadd.f32 %v1085_v38, %v1084_v29  ;;  %v987_v38 = vmax.f32 %v891_v26, 0.0  ;;  %v989_v29 = vmax.f32 %v899_v58, 0.0  ;;  %v1149_v58 = vld [vmem:[%s2033_s6 + $0x8] sm:$0xff] }
 0x140   : > { %v1088_v40 = vadd.f32 %v1087_v36, %v1086_v30  ;;  %v1111_v46 = vsel %vm998_vm2, %v987_v38, 0.0  ;;  %v990_v30 = vmax.f32 %v904_v22, 0.0  ;;  %v912_v36 = vadd.f32 %v1870_v24, %v1767_v45  ;;  %v1151_v38 = vld [vmem:[%s2033_s6 + $0x18] sm:$0xff] }
 0x141   : > { %v1115_v39 = vsel %vm998_vm2, %v989_v29, 0.0  ;;  %v923_v24 = vadd.f32 %v1767_v45, %v1893_v12  ;;  %v1063_v12 = vadd.f32 %v1062_v6, %v1904_v42  ;;  %v1420_v6 = vld [vmem:[%s2031_s4] ss:$0 sm:$0xff] }
 0x142   : > { %v1090_v47 = vadd.f32 %v1089_v44, %v1088_v40  ;;  %v1117_v27 = vsel %vm998_vm2, %v990_v30, 0.0  ;;  %v915_v40 = vadd.f32 %v1875_v33, %v1767_v45  ;;  %v991_v44 = vmax.f32 %v907_v56, 0.0 }
 0x143   : > { %v992_v37 = vmax.f32 %v912_v36, 0.0  ;;  %v928_v33 = vadd.f32 %v1886_v60, %v1767_v45  ;;  %v995_v55 = vmax.f32 %v923_v24, 0.0 }
 0x144   : > { %v1092_v11 = vadd.f32 %v1091_v48, %v1090_v47  ;;  %v993_v48 = vmax.f32 %v915_v40, 0.0 }
 0x146   : > { %v1094_v52 = vadd.f32 %v1093_v49, %v1092_v11  ;;  %v1119_v49 = vsel %vm998_vm2, %v991_v44, 0.0  ;;  %v1121_v11 = vsel %vm998_vm2, %v992_v37, 0.0  ;;  %v1123_v1 = vsel %vm998_vm2, %v993_v48, 0.0 }
 0x148   : > { %v1096_v57 = vadd.f32 %v1095_v54, %v1094_v52  ;;  %v931_v54 = vadd.f32 %v1891_v8, %v1767_v45 }
 0x14a   : > { %v1098_v3 = vadd.f32 %v1097_v4, %v1096_v57  ;;  %v996_v57 = vmax.f32 %v928_v33, 0.0  ;;  %v997_v59 = vmax.f32 %v931_v54, 0.0 }
 0x14c   : > { %v1100_v10 = vadd.f32 %v1099_v61, %v1098_v3  ;;  %v1127_v61 = vsel %vm998_vm2, %v995_v55, 0.0  ;;  %v1129_v3 = vsel %vm998_vm2, %v996_v57, 0.0  ;;  %v1131_v7 = vsel %vm998_vm2, %v997_v59, 0.0  ;;  %v1422_v57 = vld [vmem:[%s2034_s7] ss:$0 sm:$0xff] }
 0x14e   : > { %v1102_v13 = vadd.f32 %v1101_v28, %v1100_v10  ;;  %v1064_v28 = vrot.slane %v1063_v12, 2 }
 0x150   : > { %v1104_v17 = vadd.f32 %v1103_v16, %v1102_v13  ;;  %v1065_v10 = vadd.f32 %v1064_v28, %v1063_v12 }
 0x152   : > { %v1106_v19 = vadd.f32 %v1105_v15, %v1104_v17  ;;  %v1066_v8 = vrot.slane %v1065_v10, 1 }
 0x154   : > { %v1108_v23 = vadd.f32 %v1107_v20, %v1106_v19  ;;  %v1067_v16 = vadd.f32 %v1066_v8, %v1065_v10  ;;  %v1148_v19 = vld [vmem:[%s2033_s6] sm:$0xff] }
 0x155   : > { %v1240_v20 = vpack.c.bf16 %v1149_v58, %v1148_v19 }
 0x156   : > { %v1110_v25 = vadd.f32 %v1109_v21, %v1108_v23  ;;  %v1069_v26 = vmul.f32 0.00390625, %v1067_v16  ;;  %v1150_v21 = vld [vmem:[%s2033_s6 + $0x10] sm:$0xff] }
 0x157   : > { %v1241_v22 = vpack.c.bf16 %v1151_v38, %v1150_v21 }
 0x158   : > { %v1112_v31 = vadd.f32 %v1111_v46, %v1110_v25 }
 0x15a   : > { %v1114_v35 = vadd.f32 %v1113_v63, %v1112_v31 }
 0x15c   : > { %v1116_v47 = vadd.f32 %v1115_v39, %v1114_v35 }
 0x15e   : > { %v1118_v0 = vadd.f32 %v1117_v27, %v1116_v47 }
 0x160   : > { %v1120_v51 = vadd.f32 %v1119_v49, %v1118_v0 }
 0x162   : > { %v1122_v52 = vadd.f32 %v1121_v11, %v1120_v51 }
 0x164   : > { %v1124_v62 = vadd.f32 %v1123_v1, %v1122_v52  ;;  %v1421_v1 = vld [vmem:[%s2032_s5] ss:$0 sm:$0xff] }
 0x166   : > { %v1126_v4 = vadd.f32 %v1125_v53, %v1124_v62 }
 0x168   : > { %v1128_v60 = vadd.f32 %v1127_v61, %v1126_v4 }
 0x16a   : > { %v1130_v5 = vadd.f32 %v1129_v3, %v1128_v60 }
 0x16c   : > { %v1132_v18 = vadd.f32 %v1131_v7, %v1130_v5 }
 0x16e   : > { %v1133_v34 = vrot.slane %v1132_v18, 4 }
 0x170   : > { %v1134_v45 = vadd.f32 %v1133_v34, %v1132_v18 }
 0x172   : > { %v1135_v13 = vrot.slane %v1134_v45, 2 }
 0x174   : > { %v1136_v14 = vadd.f32 %v1135_v13, %v1134_v45 }
 0x176   : > { %v1137_v42 = vrot.slane %v1136_v14, 1 }
 0x178   : > { %v1138_v9 = vadd.f32 %v1137_v42, %v1136_v14 }
 0x17a   : > { %v1139_v17 = vmul.f32 0.00390625, %v1138_v9 }
 0x17c   : > { %v1141_v15 = vsel %vm1140_vm4, %v1069_v26, %v1139_v17 }
 0x17d   : > { %v1153_v32 = vpack.c.bf16 %v1141_v15, %v1141_v15 }
 0x17f   : > { %1543 = vmatmul.mubr.msk.bf16.vlgmr.msra.gmra.mrb[28].mxu1 %vm998_vm2, %v1153_v32 }
 0x180   : > { %1550 = vmatprep.mubr.msk.bf16.mxu1 %vm1615_vm3, %v1614_v41  ;;  %1547 = vmatpush3.bf16.msra.mxu1 %v1240_v20 }
 0x181   : > { %1548 = vmatprep.subr.bf16.mxu1 %v1614_v41 }
 0x184   : > { %1549 = vmatpush3.bf16.msra.mxu1 %v1241_v22 }
 0x252   : > { %v1193_v23 = vpop.f32.mrb[28].mxu1 }
 0x253   : > { %v1200_v2 = vsel %vm1199_vm5, %v1193_v23, 0.0  ;;  %v1207_v25 = vmul.f32 %v1193_v23, %v1193_v23  ;;  %v1544_v29 = vpop.f32.mrb[29].mxu1 }
 0x254   : > { %v1201_v46 = vrot.slane %v1200_v2, 4  ;;  %v1196_v30 = vpop.f32.mrb[30].mxu1 }
 0x255   : > { %v1208_v56 = vsel %vm1199_vm5, %v1207_v25, 0.0  ;;  %v1545_v31 = vpop.f32.mrb[31].mxu1 }
 0x256   : > { %v1202_v41 = vadd.f32 %v1201_v46, %v1200_v2  ;;  %v1209_v63 = vrot.slane %v1208_v56, 4 }
 0x258   : > { %v1203_v36 = vrot.slane %v1202_v41, 2  ;;  %v1210_v39 = vadd.f32 %v1209_v63, %v1208_v56 }
 0x25a   : > { %v1204_v35 = vadd.f32 %v1203_v36, %v1202_v41  ;;  %v1211_v27 = vrot.slane %v1210_v39, 2 }
 0x25c   : > { %v1205_v40 = vrot.slane %v1204_v35, 1  ;;  %v1212_v44 = vadd.f32 %v1211_v27, %v1210_v39 }
 0x25e   : > { %v1206_v43 = vadd.f32 %v1205_v40, %v1204_v35  ;;  %v1213_v47 = vrot.slane %v1212_v44, 1 }
 0x260   : > { %v1214_v37 = vadd.f32 %v1213_v47, %v1212_v44  ;;  %v1215_v0 = vmul.f32 0.5, %v1206_v43 }
 0x262   : > { %v1216_v48 = vmul.f32 0.5, %v1214_v37  ;;  %v1217_v49 = vmul.f32 %v1215_v0, %v1215_v0  ;;  %v1220_v11 = vsub.f32 %v1193_v23, %v1215_v0 }
 0x264   : > { %v1218_v50 = vsub.f32 %v1216_v48, %v1217_v49 }
 0x266   : > { %v1219_v24 = vmax.f32 %v1218_v50, 0.0 }
 0x268   : > { %v1221_v51 = vadd.f32 1e-05, %v1219_v24 }
 0x26a   : > { %1604 = vrsqrt.f32 %v1221_v51 }
 0x274   : > { %v1605_v33 = vpop.eup %1604 }
 0x275   : > { %v1223_v52 = vmul.f32 %v1605_v33, %v1220_v11 }
 0x277   : > { %v1230_v53 = vmul.f32 %v1420_v6, %v1223_v52 }
 0x279   : > { %v1237_v54 = vadd.f32 %v1421_v1, %v1230_v53 }
 0x27b   : > { %v1238_v55 = vmax.f32 %v1237_v54, 0.0 }
 0x27d   : > { %v1239_v62 = vpack.c.bf16 %v1238_v55, %v1238_v55 }
 0x27f   : > { %1551 = vmatmul.mubr.msk.bf16.vlgmr.msra.gmra.mrb[32].mxu1 %vm998_vm2, %v1239_v62 }
 0x352   : > { %v1285_v12 = vpop.f32.mrb[32].mxu1 }
 0x353   : > { %v1286_v4 = vadd.f32 %v1422_v57, %v1285_v12  ;;  %v1552_v59 = vpop.f32.mrb[33].mxu1 }
 0x354   : > { %v1288_v61 = vpop.f32.mrb[34].mxu1 }
 0x355   : > { %1292 = vst.msk [vmem:[%s303_s30] sm:$0x3] %vm1291_vm6, %v1286_v4  ;;  %v1553_v60 = vpop.f32.mrb[35].mxu1 }
 0x356 PF: > { %s18_s27 = sadd.s32 1, %s1612_s27  }
 0x357   : > { %p15_p4 = scmp.ge.s32.totalorder %s18_s27, 4  }
 0x359   :  { %17 = sbr.rel (!%p15_p4) target bundleno = 1 (0x1), region = 82 }

// kernel: byol_forward.2
= control target key start
LH: loop header
LB: loop body
LE: loop exit
PB: predicated region body
PF: predicated region fallthrough
CT: control target
= control target key end

     0   :  { %s1993_s25 = smov 0   ;;  %s2386_s0 = inlined_call_operand.vmem [shape: bf16[2,512,36], index: 0, kind: input, shape index: {}]   ;;  %s2387_s1 = inlined_call_operand.vmem [shape: f32[36,32], index: 1, kind: input, shape index: {}]   ;;  %s2388_s2 = inlined_call_operand.vmem [shape: f32[1,32], index: 2, kind: input, shape index: {}]   ;;  %s2389_s3 = inlined_call_operand.vmem [shape: f32[32,32], index: 3, kind: input, shape index: {}]   ;;  %s2390_s4 = inlined_call_operand.vmem [shape: f32[1,32], index: 4, kind: input, shape index: {}]   ;;  %s2391_s5 = inlined_call_operand.vmem [shape: f32[1,32], index: 5, kind: input, shape index: {}]   ;;  %s2392_s6 = inlined_call_operand.vmem [shape: f32[32,16], index: 6, kind: input, shape index: {}]   ;;  %s2393_s7 = inlined_call_operand.vmem [shape: f32[1,16], index: 7, kind: input, shape index: {}]   ;;  %s2394_s8 = inlined_call_operand.vmem [shape: f32[16,32], index: 8, kind: input, shape index: {}]   ;;  %s2395_s9 = inlined_call_operand.vmem [shape: f32[1,32], index: 9, kind: input, shape index: {}]   ;;  %s2396_s10 = inlined_call_operand.vmem [shape: f32[1,32], index: 10, kind: input, shape index: {}]   ;;  %s2397_s11 = inlined_call_operand.vmem [shape: f32[32,16], index: 11, kind: input, shape index: {}]   ;;  %s2398_s12 = inlined_call_operand.vmem [shape: f32[1,16], index: 12, kind: input, shape index: {}]   ;;  %s2399_s13 = inlined_call_operand.vmem [shape: f32[2,2,16], index: 13, kind: output, shape index: {}]  }
   0x1 LB: > { %s1627_s26 = sadd.s32 4294967295, %s1919_s25   ;;  %p1631_p0 = scmp.ge.s32.totalorder %s1919_s25, 1  ;;  %s1919_s25 = sphi %s1993_s25, %s23_s25  }
   0x2   : > { %p387_p1 = scmp.lt.s32.totalorder %s1919_s25, 3 }
   0x4   : > { %p388_p2 = pnand %p1631_p0, %p387_p1 }
   0x5   : > { %v504_v0 = vld [vmem:[%s2387_s1] sm:$0xff] (!%p388_p2)  ;;  %v505_v1 = vld [vmem:[%s2387_s1 + $0x8] sm:$0xff] (!%p388_p2)  ;;  %v506_v2 = vld [vmem:[%s2387_s1 + $0x10] sm:$0xff] (!%p388_p2)  ;;  %p430_p3 = scmp.lt.s32.totalorder (!%p388_p2), %s1627_s26, 1  ;;  %vm679_vm0 = vcmask (!%p388_p2), 293888   ;;  %vm776_vm1 = vcmask (!%p388_p2), 1041408  }
   0x6   : > { %391 = sbr.rel (%p388_p2) target bundleno = 1326 (0x52e), region = 72  ;;  %v510_v3 = vpack.c.bf16 (!%p388_p2), %v505_v1, %v504_v0  ;;  %v507_v4 = vld [vmem:[%s2387_s1 + $0x18] sm:$0xff] (!%p388_p2)  ;;  %v508_v6 = vld [vmem:[%s2387_s1 + $0x20] sm:$0xf] (!%p388_p2)  ;;  %v1921_v41 = vmov (!%p388_p2), 0.0   ;;  %v1278_v43 = vld [vmem:[%s2389_s3 + $0x8] sm:$0xff] (!%p388_p2) }
   0x7   : > { %v511_v5 = vpack.c.bf16 (!%p388_p2), %v507_v4, %v506_v2  ;;  %v512_v7 = vpack.c.bf16 (!%p388_p2), %v508_v6, %v508_v6  ;;  %v1277_v42 = vld [vmem:[%s2389_s3] sm:$0xff] (!%p388_p2)  ;;  %vm1133_vm2 = vcmask (!%p388_p2), 261120   ;;  %vm1922_vm3 = vmmov (!%p388_p2), 0  }
   0x8   : > { %1759 = vmatprep.subr.bf16.mxu0 (!%p388_p2), %v510_v3  ;;  %1859 = vmatprep.subr.bf16.mxu1 (!%p388_p2), %v510_v3  ;;  %v1289_v44 = vpack.c.bf16 (!%p388_p2), %v1278_v43, %v1277_v42  ;;  %v2099_v45 = vld [vmem:[%s2388_s2] ss:$0 sm:$0xff] (!%p388_p2)  ;;  %vm1275_vm4 = vcmask (!%p388_p2), 1040384   ;;  %vm1334_vm5 = vcmask (!%p388_p2), 254976   ;;  %vm1437_vm6 = vcmask (!%p388_p2), 130048  }
   0x9   : > { %1760 = vmatpush3.bf16.msra.mxu0 (!%p388_p2), %v510_v3  ;;  %1862 = vmatpush3.bf16.msra.mxu1 (!%p388_p2), %v510_v3  ;;  %v778_v9 = vsel (!%p388_p2), %vm776_vm1, %v512_v7, 0  ;;  %vm1572_vm7 = vcmask (!%p388_p2), 123904  }
   0xa   : > { %1761 = vmatprep.subr.bf16.mxu0 (!%p388_p2), %v511_v5  ;;  %1860 = vmatprep.subr.bf16.mxu1 (!%p388_p2), %v511_v5 }
   0xd   : > { %s2401_s26 = smov (!%p430_p3, %s1627_s26), 1  ;;  %1762 = vmatpush3.bf16.msra.mxu0 %v511_v5  ;;  %1863 = vmatpush3.bf16.msra.mxu1 %v511_v5 }
   0xe   : > { %s1712_s20 = sshll.u32 %s2401_s26, 8  ;;  %1865 = vmatprep.subr.msk.bf16.mxu0 %vm776_vm1, %v512_v7  ;;  %1866 = vmatprep.subr.msk.bf16.mxu1 %vm776_vm1, %v512_v7  ;;  %s1634_s19 = sshll.u32 %s2401_s26, 1 }
   0xf   : > { %s2022_s23 = scalar_lea.vmem %s2386_s0, %s1712_s20  ;;  %s438_s24 = scalar_lea.vmem %s2399_s13, %s1634_s19 }
  0x10   : > { %v1877_v8 = vld [vmem:[%s2022_s23] sm:$0xff]   ;;  %v1878_v10 = vld [vmem:[%s2022_s23 + $0x8] sm:$0xff]   ;;  %v1879_v11 = vld [vmem:[%s2022_s23 + $0x10] sm:$0xff]  }
  0x11   : > { %1765 = vmatprep.mubr.msk.bf16.mxu0 %vm679_vm0, %v1877_v8  ;;  %1764 = vmatpush3.bf16.msra.mxu0 %v778_v9  ;;  %v1880_v12 = vld [vmem:[%s2022_s23 + $0x18] sm:$0xff]   ;;  %v1881_v13 = vld [vmem:[%s2022_s23 + $0x20] sm:$0xff]   ;;  %v1882_v14 = vld [vmem:[%s2022_s23 + $0x28] sm:$0xff]  }
  0x12   : > { %1864 = vmatpush3.bf16.msra.mxu1 %v778_v9  ;;  %v1883_v15 = vld [vmem:[%s2022_s23 + $0x30] sm:$0xff]   ;;  %v1897_v16 = vld [vmem:[%s2022_s23 + $0xa0] sm:$0xff]   ;;  %v1898_v17 = vld [vmem:[%s2022_s23 + $0xa8] sm:$0xff]  }
  0x13   : > { %1805 = vmatprep.mubr.msk.bf16.mxu1 %vm679_vm0, %v1897_v16  ;;  %v1899_v18 = vld [vmem:[%s2022_s23 + $0xb0] sm:$0xff]   ;;  %v1900_v19 = vld [vmem:[%s2022_s23 + $0xb8] sm:$0xff]   ;;  %v1901_v20 = vld [vmem:[%s2022_s23 + $0xc0] sm:$0xff]   ;;  %1829 = vmatprep.subr.bf16.mxu1 %v1921_v41 }
  0x14   : > { %1766 = vmatmul.mubr.msk.bf16.vlgmr.msra.gmra.mrb[0].mxu0 %vm679_vm0, %v1878_v10  ;;  %v1884_v21 = vld [vmem:[%s2022_s23 + $0x38] sm:$0xff]   ;;  %v1885_v22 = vld [vmem:[%s2022_s23 + $0x40] sm:$0xff]   ;;  %v1902_v23 = vld [vmem:[%s2022_s23 + $0xc8] sm:$0xff]  }
  0x15   : > { %1769 = vmatprep.mubr.msk.bf16.mxu0 %vm679_vm0, %v1879_v11  ;;  %1806 = vmatmul.mubr.msk.bf16.vlgmr.msra.gmra.mrb[0].mxu1 %vm679_vm0, %v1898_v17  ;;  %v1903_v24 = vld [vmem:[%s2022_s23 + $0xd0] sm:$0xff]   ;;  %v1886_v25 = vld [vmem:[%s2022_s23 + $0x48] sm:$0xff]   ;;  %v1904_v27 = vld [vmem:[%s2022_s23 + $0xd8] sm:$0xff]  }
  0x16   : > { %1809 = vmatprep.mubr.msk.bf16.mxu1 %vm679_vm0, %v1899_v18  ;;  %v1887_v26 = vld [vmem:[%s2022_s23 + $0x50] sm:$0xff]   ;;  %v1905_v28 = vld [vmem:[%s2022_s23 + $0xe0] sm:$0xff]   ;;  %v1888_v29 = vld [vmem:[%s2022_s23 + $0x58] sm:$0xff]   ;;  %1830 = vmatpush3.bf16.msra.mxu1 %v1289_v44 }
  0x17   : > { %v1889_v30 = vld [vmem:[%s2022_s23 + $0x60] sm:$0xff]   ;;  %v1906_v31 = vld [vmem:[%s2022_s23 + $0xe8] sm:$0xff]   ;;  %v1907_v32 = vld [vmem:[%s2022_s23 + $0xf0] sm:$0xff]   ;;  %1831 = vmatprep.subr.bf16.mxu1 %v1921_v41 }
  0x18   : > { %v1890_v33 = vld [vmem:[%s2022_s23 + $0x68] sm:$0xff]   ;;  %v1891_v34 = vld [vmem:[%s2022_s23 + $0x70] sm:$0xff]   ;;  %v1908_v35 = vld [vmem:[%s2022_s23 + $0xf8] sm:$0xff]  }
  0x19   : > { %v1892_v36 = vld [vmem:[%s2022_s23 + $0x78] sm:$0xff]   ;;  %v1893_v37 = vld [vmem:[%s2022_s23 + $0x80] sm:$0xff]   ;;  %v1894_v38 = vld [vmem:[%s2022_s23 + $0x88] sm:$0xff]  }
  0x1a   : > { %v1895_v39 = vld [vmem:[%s2022_s23 + $0x90] sm:$0xff]   ;;  %v1896_v40 = vld [vmem:[%s2022_s23 + $0x98] sm:$0xff]  }
  0x1c   : > { %1770 = vmatmul.mubr.msk.bf16.gmra.mrb[4].mxu0 %vm679_vm0, %v1880_v12 }
  0x1d   : > { %1773 = vmatprep.mubr.msk.bf16.mxu0 %vm679_vm0, %v1881_v13  ;;  %1810 = vmatmul.mubr.msk.bf16.gmra.mrb[4].mxu1 %vm679_vm0, %v1900_v19 }
  0x1e   : > { %1813 = vmatprep.mubr.msk.bf16.mxu1 %vm679_vm0, %v1901_v20 }
  0x24   : > { %1774 = vmatmul.mubr.msk.bf16.gmra.mrb[8].mxu0 %vm679_vm0, %v1882_v14 }
  0x25   : > { %1777 = vmatprep.mubr.msk.bf16.mxu0 %vm679_vm0, %v1883_v15  ;;  %1814 = vmatmul.mubr.msk.bf16.gmra.mrb[8].mxu1 %vm679_vm0, %v1902_v23 }
  0x26   : > { %1817 = vmatprep.mubr.msk.bf16.mxu1 %vm679_vm0, %v1903_v24 }
  0x2c   : > { %1778 = vmatmul.mubr.msk.bf16.gmra.mrb[12].mxu0 %vm679_vm0, %v1884_v21 }
  0x2d   : > { %1781 = vmatprep.mubr.msk.bf16.mxu0 %vm679_vm0, %v1885_v22  ;;  %1818 = vmatmul.mubr.msk.bf16.gmra.mrb[12].mxu1 %vm679_vm0, %v1904_v27 }
  0x2e   : > { %1821 = vmatprep.mubr.msk.bf16.mxu1 %vm679_vm0, %v1905_v28 }
  0x34   : > { %1782 = vmatmul.mubr.msk.bf16.gmra.mrb[16].mxu0 %vm679_vm0, %v1886_v25 }
  0x35   : > { %1785 = vmatprep.mubr.msk.bf16.mxu0 %vm679_vm0, %v1887_v26  ;;  %1822 = vmatmul.mubr.msk.bf16.gmra.mrb[16].mxu1 %vm679_vm0, %v1906_v31 }
  0x36   : > { %1825 = vmatprep.mubr.msk.bf16.mxu1 %vm679_vm0, %v1907_v32 }
  0x3c   : > { %1786 = vmatmul.mubr.msk.bf16.gmra.mrb[20].mxu0 %vm679_vm0, %v1888_v29  ;;  %v1279_v29 = vld [vmem:[%s2389_s3 + $0x10] sm:$0xff] }
  0x3d   : > { %1789 = vmatprep.mubr.msk.bf16.mxu0 %vm679_vm0, %v1889_v30  ;;  %1826 = vmatmul.mubr.msk.bf16.gmra.mrb[20].mxu1 %vm679_vm0, %v1908_v35  ;;  %v1280_v30 = vld [vmem:[%s2389_s3 + $0x18] sm:$0xff] }
  0x3e   : > { %1833 = vmatprep.mubr.msk.bf16.mxu1 %vm1922_vm3, %v1921_v41 }
  0x44   : > { %1790 = vmatmul.mubr.msk.bf16.gmra.mrb[24].mxu0 %vm679_vm0, %v1890_v33 }
  0x45   : > { %1793 = vmatprep.mubr.msk.bf16.mxu0 %vm679_vm0, %v1891_v34 }
  0x4c   : > { %1794 = vmatmul.mubr.msk.bf16.gmra.mrb[28].mxu0 %vm679_vm0, %v1892_v36 }
  0x4d   : > { %1797 = vmatprep.mubr.msk.bf16.mxu0 %vm679_vm0, %v1893_v37 }
  0x54   : > { %1798 = vmatmul.mubr.msk.bf16.gmra.mrb[32].mxu0 %vm679_vm0, %v1894_v38 }
  0x55   : > { %1801 = vmatprep.mubr.msk.bf16.mxu0 %vm679_vm0, %v1895_v39 }
  0x5c   : > { %1802 = vmatmul.mubr.msk.bf16.gmra.mrb[36].mxu0 %vm679_vm0, %v1896_v40  ;;  %v1290_v40 = vpack.c.bf16 %v1280_v30, %v1279_v29 }
  0x5e   : > { %1832 = vmatpush3.bf16.msra.mxu1 %v1290_v40 }
  0x5f   : > { %1837 = vmatprep.subr.bf16.mxu1 %v1921_v41 }
  0xe7   : > { %v1767_v46 = vpop.f32.mrb[0].mxu0 }
  0xe8   : > { %v814_v47 = vpop.f32.mrb[1].mxu0  ;;  %v823_v48 = vadd.f32 %v1767_v46, %v2099_v45  ;;  %v2114_v13 = vpop.f32.mrb[0].mxu1 }
  0xe9   : > { %v815_v49 = vadd.f32 %v2099_v45, %v814_v47  ;;  %v1768_v50 = vpop.f32.mrb[2].mxu0  ;;  %v2116_v15 = vpop.f32.mrb[1].mxu1 }
  0xea   : > { %v817_v51 = vpop.f32.mrb[3].mxu0  ;;  %v826_v53 = vadd.f32 %v1768_v50, %v2099_v45  ;;  %v1071_v55 = vmax.f32 %v823_v48, 0.0  ;;  %v2119_v19 = vpop.f32.mrb[2].mxu1 }
  0xeb   : > { %v1069_v52 = vmax.f32 %v815_v49, 0.0  ;;  %v818_v54 = vadd.f32 %v2099_v45, %v817_v51  ;;  %v2121_v22 = vpop.f32.mrb[3].mxu1 }
  0xec   : > { %v1072_v58 = vmax.f32 %v826_v53, 0.0  ;;  %v1137_v63 = vsel %vm1133_vm2, %v1071_v55, 0.0 }
  0xed   : > { %v1070_v56 = vmax.f32 %v818_v54, 0.0  ;;  %v1134_v57 = vsel %vm1133_vm2, %v1069_v52, 0.0 }
  0xee   : > { %v1139_v5 = vsel %vm1133_vm2, %v1072_v58, 0.0 }
  0xef   : > { %v1135_v59 = vsel %vm1133_vm2, %v1070_v56, 0.0  ;;  %v1771_v60 = vpop.f32.mrb[4].mxu0 }
  0xf0   : > { %v1136_v61 = vadd.f32 %v1135_v59, %v1134_v57  ;;  %v830_v62 = vpop.f32.mrb[5].mxu0  ;;  %v839_v0 = vadd.f32 %v1771_v60, %v2099_v45  ;;  %v2136_v39 = vpop.f32.mrb[4].mxu1 }
  0xf1   : > { %v831_v1 = vadd.f32 %v2099_v45, %v830_v62  ;;  %v1772_v2 = vpop.f32.mrb[6].mxu0  ;;  %v2138_v43 = vpop.f32.mrb[5].mxu1 }
  0xf2   : > { %v1138_v3 = vadd.f32 %v1137_v63, %v1136_v61  ;;  %v833_v4 = vpop.f32.mrb[7].mxu0  ;;  %v842_v7 = vadd.f32 %v1772_v2, %v2099_v45  ;;  %v1075_v10 = vmax.f32 %v839_v0, 0.0  ;;  %v2141_v48 = vpop.f32.mrb[6].mxu1 }
  0xf3   : > { %v1073_v6 = vmax.f32 %v831_v1, 0.0  ;;  %v834_v8 = vadd.f32 %v2099_v45, %v833_v4  ;;  %v2143_v51 = vpop.f32.mrb[7].mxu1 }
  0xf4   : > { %v1140_v9 = vadd.f32 %v1139_v5, %v1138_v3  ;;  %v1076_v16 = vmax.f32 %v842_v7, 0.0  ;;  %v1145_v23 = vsel %vm1133_vm2, %v1075_v10, 0.0 }
  0xf5   : > { %v1141_v11 = vsel %vm1133_vm2, %v1073_v6, 0.0  ;;  %v1074_v12 = vmax.f32 %v834_v8, 0.0 }
  0xf6   : > { %v1142_v14 = vadd.f32 %v1141_v11, %v1140_v9  ;;  %v1147_v31 = vsel %vm1133_vm2, %v1076_v16, 0.0 }
  0xf7   : > { %v1143_v17 = vsel %vm1133_vm2, %v1074_v12, 0.0  ;;  %v1775_v18 = vpop.f32.mrb[8].mxu0 }
  0xf8   : > { %v1144_v20 = vadd.f32 %v1143_v17, %v1142_v14  ;;  %v846_v21 = vpop.f32.mrb[9].mxu0  ;;  %v855_v24 = vadd.f32 %v1775_v18, %v2099_v45  ;;  %v2155_v2 = vpop.f32.mrb[8].mxu1 }
  0xf9   : > { %v847_v25 = vadd.f32 %v2099_v45, %v846_v21  ;;  %v1776_v26 = vpop.f32.mrb[10].mxu0  ;;  %v2157_v4 = vpop.f32.mrb[9].mxu1 }
  0xfa   : > { %v1146_v27 = vadd.f32 %v1145_v23, %v1144_v20  ;;  %v849_v28 = vpop.f32.mrb[11].mxu0  ;;  %v858_v33 = vadd.f32 %v1776_v26, %v2099_v45  ;;  %v1079_v36 = vmax.f32 %v855_v24, 0.0  ;;  %v2160_v8 = vpop.f32.mrb[10].mxu1 }
  0xfb   : > { %v1077_v32 = vmax.f32 %v847_v25, 0.0  ;;  %v850_v34 = vadd.f32 %v2099_v45, %v849_v28  ;;  %v2162_v11 = vpop.f32.mrb[11].mxu1 }
  0xfc   : > { %v1148_v35 = vadd.f32 %v1147_v31, %v1146_v27  ;;  %v1080_v44 = vmax.f32 %v858_v33, 0.0  ;;  %v1153_v52 = vsel %vm1133_vm2, %v1079_v36, 0.0 }
  0xfd   : > { %v1149_v37 = vsel %vm1133_vm2, %v1077_v32, 0.0  ;;  %v1078_v38 = vmax.f32 %v850_v34, 0.0 }
  0xfe   : > { %v1150_v42 = vadd.f32 %v1149_v37, %v1148_v35  ;;  %v1155_v58 = vsel %vm1133_vm2, %v1080_v44, 0.0 }
  0xff   : > { %v1151_v46 = vsel %vm1133_vm2, %v1078_v38, 0.0  ;;  %v1779_v47 = vpop.f32.mrb[12].mxu0 }
 0x100   : > { %v1152_v49 = vadd.f32 %v1151_v46, %v1150_v42  ;;  %v862_v50 = vpop.f32.mrb[13].mxu0  ;;  %v871_v53 = vadd.f32 %v1779_v47, %v2099_v45  ;;  %v2171_v30 = vpop.f32.mrb[12].mxu1 }
 0x101   : > { %v863_v54 = vadd.f32 %v2099_v45, %v862_v50  ;;  %v1780_v55 = vpop.f32.mrb[14].mxu0  ;;  %v2173_v32 = vpop.f32.mrb[13].mxu1 }
 0x102   : > { %v1154_v56 = vadd.f32 %v1153_v52, %v1152_v49  ;;  %v865_v57 = vpop.f32.mrb[15].mxu0  ;;  %v874_v60 = vadd.f32 %v1780_v55, %v2099_v45  ;;  %v1083_v63 = vmax.f32 %v871_v53, 0.0  ;;  %v2176_v36 = vpop.f32.mrb[14].mxu1 }
 0x103   : > { %v1081_v59 = vmax.f32 %v863_v54, 0.0  ;;  %v866_v61 = vadd.f32 %v2099_v45, %v865_v57  ;;  %v2178_v40 = vpop.f32.mrb[15].mxu1 }
 0x104   : > { %v1156_v62 = vadd.f32 %v1155_v58, %v1154_v56  ;;  %v1084_v5 = vmax.f32 %v874_v60, 0.0  ;;  %v1161_v12 = vsel %vm1133_vm2, %v1083_v63, 0.0 }
 0x105   : > { %v1157_v0 = vsel %vm1133_vm2, %v1081_v59, 0.0  ;;  %v1082_v1 = vmax.f32 %v866_v61, 0.0 }
 0x106   : > { %v1158_v3 = vadd.f32 %v1157_v0, %v1156_v62  ;;  %v1163_v21 = vsel %vm1133_vm2, %v1084_v5, 0.0 }
 0x107   : > { %v1159_v6 = vsel %vm1133_vm2, %v1082_v1, 0.0  ;;  %v1783_v7 = vpop.f32.mrb[16].mxu0 }
 0x108   : > { %v1160_v9 = vadd.f32 %v1159_v6, %v1158_v3  ;;  %v878_v10 = vpop.f32.mrb[17].mxu0  ;;  %v887_v14 = vadd.f32 %v1783_v7, %v2099_v45  ;;  %v2187_v60 = vpop.f32.mrb[16].mxu1 }
 0x109   : > { %v879_v16 = vadd.f32 %v2099_v45, %v878_v10  ;;  %v1784_v17 = vpop.f32.mrb[18].mxu0  ;;  %v2189_v62 = vpop.f32.mrb[17].mxu1 }
 0x10a   : > { %v1162_v18 = vadd.f32 %v1161_v12, %v1160_v9  ;;  %v881_v20 = vpop.f32.mrb[19].mxu0  ;;  %v890_v24 = vadd.f32 %v1784_v17, %v2099_v45  ;;  %v1087_v27 = vmax.f32 %v887_v14, 0.0  ;;  %v2192_v3 = vpop.f32.mrb[18].mxu1 }
 0x10b   : > { %v1085_v23 = vmax.f32 %v879_v16, 0.0  ;;  %v882_v25 = vadd.f32 %v2099_v45, %v881_v20  ;;  %v2194_v7 = vpop.f32.mrb[19].mxu1 }
 0x10c   : > { %v1164_v26 = vadd.f32 %v1163_v21, %v1162_v18  ;;  %v1088_v33 = vmax.f32 %v890_v24, 0.0  ;;  %v1169_v42 = vsel %vm1133_vm2, %v1087_v27, 0.0 }
 0x10d   : > { %v1165_v28 = vsel %vm1133_vm2, %v1085_v23, 0.0  ;;  %v1086_v29 = vmax.f32 %v882_v25, 0.0 }
 0x10e   : > { %v1166_v31 = vadd.f32 %v1165_v28, %v1164_v26  ;;  %v1171_v52 = vsel %vm1133_vm2, %v1088_v33, 0.0 }
 0x10f   : > { %v1167_v34 = vsel %vm1133_vm2, %v1086_v29, 0.0  ;;  %v1787_v35 = vpop.f32.mrb[20].mxu0 }
 0x110   : > { %v1168_v37 = vadd.f32 %v1167_v34, %v1166_v31  ;;  %v894_v38 = vpop.f32.mrb[21].mxu0  ;;  %v903_v44 = vadd.f32 %v1787_v35, %v2099_v45  ;;  %v2203_v28 = vpop.f32.mrb[20].mxu1 }
 0x111   : > { %v895_v46 = vadd.f32 %v2099_v45, %v894_v38  ;;  %v1788_v47 = vpop.f32.mrb[22].mxu0  ;;  %v2205_v31 = vpop.f32.mrb[21].mxu1 }
 0x112   : > { %v1170_v49 = vadd.f32 %v1169_v42, %v1168_v37  ;;  %v897_v50 = vpop.f32.mrb[23].mxu0  ;;  %v906_v54 = vadd.f32 %v1788_v47, %v2099_v45  ;;  %v1091_v57 = vmax.f32 %v903_v44, 0.0  ;;  %v2208_v37 = vpop.f32.mrb[22].mxu1 }
 0x113   : > { %v1089_v53 = vmax.f32 %v895_v46, 0.0  ;;  %v898_v55 = vadd.f32 %v2099_v45, %v897_v50  ;;  %v2210_v44 = vpop.f32.mrb[23].mxu1 }
 0x114   : > { %v1172_v56 = vadd.f32 %v1171_v52, %v1170_v49  ;;  %v1092_v63 = vmax.f32 %v906_v54, 0.0  ;;  %v1177_v9 = vsel %vm1133_vm2, %v1091_v57, 0.0 }
 0x115   : > { %v1173_v58 = vsel %vm1133_vm2, %v1089_v53, 0.0  ;;  %v1090_v59 = vmax.f32 %v898_v55, 0.0 }
 0x116   : > { %v1174_v61 = vadd.f32 %v1173_v58, %v1172_v56  ;;  %v1179_v18 = vsel %vm1133_vm2, %v1092_v63, 0.0 }
 0x117   : > { %v1175_v0 = vsel %vm1133_vm2, %v1090_v59, 0.0  ;;  %v1791_v1 = vpop.f32.mrb[24].mxu0 }
 0x118   : > { %v1176_v5 = vadd.f32 %v1175_v0, %v1174_v61  ;;  %v910_v6 = vpop.f32.mrb[25].mxu0  ;;  %v919_v10 = vadd.f32 %v1791_v1, %v2099_v45 }
 0x119   : > { %v911_v12 = vadd.f32 %v2099_v45, %v910_v6  ;;  %v1792_v14 = vpop.f32.mrb[26].mxu0 }
 0x11a   : > { %v1178_v16 = vadd.f32 %v1177_v9, %v1176_v5  ;;  %v913_v17 = vpop.f32.mrb[27].mxu0  ;;  %v922_v21 = vadd.f32 %v1792_v14, %v2099_v45  ;;  %v1095_v25 = vmax.f32 %v919_v10, 0.0 }
 0x11b   : > { %v1093_v20 = vmax.f32 %v911_v12, 0.0  ;;  %v914_v23 = vadd.f32 %v2099_v45, %v913_v17 }
 0x11c   : > { %v1180_v24 = vadd.f32 %v1179_v18, %v1178_v16  ;;  %v1096_v33 = vmax.f32 %v922_v21, 0.0  ;;  %v1185_v46 = vsel %vm1133_vm2, %v1095_v25, 0.0 }
 0x11d   : > { %v1181_v26 = vsel %vm1133_vm2, %v1093_v20, 0.0  ;;  %v1094_v27 = vmax.f32 %v914_v23, 0.0 }
 0x11e   : > { %v1182_v29 = vadd.f32 %v1181_v26, %v1180_v24  ;;  %v1187_v54 = vsel %vm1133_vm2, %v1096_v33, 0.0 }
 0x11f   : > { %v1183_v34 = vsel %vm1133_vm2, %v1094_v27, 0.0  ;;  %v1795_v35 = vpop.f32.mrb[28].mxu0 }
 0x120   : > { %v1184_v38 = vadd.f32 %v1183_v34, %v1182_v29  ;;  %v926_v42 = vpop.f32.mrb[29].mxu0  ;;  %v935_v47 = vadd.f32 %v1795_v35, %v2099_v45 }
 0x121   : > { %v927_v49 = vadd.f32 %v2099_v45, %v926_v42  ;;  %v1796_v50 = vpop.f32.mrb[30].mxu0 }
 0x122   : > { %v1186_v52 = vadd.f32 %v1185_v46, %v1184_v38  ;;  %v929_v53 = vpop.f32.mrb[31].mxu0  ;;  %v938_v56 = vadd.f32 %v1796_v50, %v2099_v45  ;;  %v1099_v59 = vmax.f32 %v935_v47, 0.0 }
 0x123   : > { %v1097_v55 = vmax.f32 %v927_v49, 0.0  ;;  %v930_v57 = vadd.f32 %v2099_v45, %v929_v53 }
 0x124   : > { %v1188_v58 = vadd.f32 %v1187_v54, %v1186_v52  ;;  %v1100_v1 = vmax.f32 %v938_v56, 0.0  ;;  %v1193_v12 = vsel %vm1133_vm2, %v1099_v59, 0.0 }
 0x125   : > { %v1189_v61 = vsel %vm1133_vm2, %v1097_v55, 0.0  ;;  %v1098_v63 = vmax.f32 %v930_v57, 0.0  ;;  %v975_v55 = vadd.f32 %v2099_v45, %v2116_v15  ;;  %v978_v15 = vadd.f32 %v2099_v45, %v2121_v22 }
 0x126   : > { %v1190_v0 = vadd.f32 %v1189_v61, %v1188_v58  ;;  %v1195_v21 = vsel %vm1133_vm2, %v1100_v1, 0.0 }
 0x127   : > { %v1191_v5 = vsel %vm1133_vm2, %v1098_v63, 0.0  ;;  %v1799_v6 = vpop.f32.mrb[32].mxu0 }
 0x128   : > { %v1192_v9 = vadd.f32 %v1191_v5, %v1190_v0  ;;  %v942_v10 = vpop.f32.mrb[33].mxu0  ;;  %v951_v14 = vadd.f32 %v1799_v6, %v2099_v45 }
 0x129   : > { %v943_v16 = vadd.f32 %v2099_v45, %v942_v10  ;;  %v1800_v17 = vpop.f32.mrb[34].mxu0  ;;  %v1109_v10 = vmax.f32 %v975_v55, 0.0 }
 0x12a   : > { %v1194_v18 = vadd.f32 %v1193_v12, %v1192_v9  ;;  %v945_v20 = vpop.f32.mrb[35].mxu0  ;;  %v954_v24 = vadd.f32 %v1800_v17, %v2099_v45  ;;  %v1103_v27 = vmax.f32 %v951_v14, 0.0 }
 0x12b   : > { %v1101_v23 = vmax.f32 %v943_v16, 0.0  ;;  %v946_v25 = vadd.f32 %v2099_v45, %v945_v20  ;;  %v983_v16 = vadd.f32 %v2114_v13, %v2099_v45  ;;  %v994_v13 = vadd.f32 %v2099_v45, %v2143_v51 }
 0x12c   : > { %v2226_v26 = vadd.f32 %v1195_v21, %v1194_v18  ;;  %v1104_v34 = vmax.f32 %v954_v24, 0.0  ;;  %v1208_v47 = vsel %vm1133_vm2, %v1103_v27, 0.0  ;;  %v986_v18 = vadd.f32 %v2119_v19, %v2099_v45 }
 0x12d   : > { %v1102_v29 = vmax.f32 %v946_v25, 0.0  ;;  %v1205_v33 = vsel %vm1133_vm2, %v1101_v23, 0.0  ;;  %v1220_v21 = vsel %vm1133_vm2, %v1109_v10, 0.0  ;;  %v1110_v23 = vmax.f32 %v978_v15, 0.0 }
 0x12e   : > { %v1210_v56 = vsel %vm1133_vm2, %v1104_v34, 0.0  ;;  %v991_v24 = vadd.f32 %v2099_v45, %v2138_v43  ;;  %v1111_v22 = vmax.f32 %v983_v16, 0.0  ;;  %v1002_v43 = vadd.f32 %v2141_v48, %v2099_v45 }
 0x12f   : > { %v1206_v35 = vsel %vm1133_vm2, %v1102_v29, 0.0  ;;  %v1803_v38 = vpop.f32.mrb[36].mxu0  ;;  %v1112_v29 = vmax.f32 %v986_v18, 0.0 }
 0x130   : > { %v1207_v42 = vadd.f32 %v1206_v35, %v1205_v33  ;;  %v958_v46 = vpop.f32.mrb[37].mxu0  ;;  %v967_v49 = vadd.f32 %v1803_v38, %v2099_v45  ;;  %v1222_v33 = vsel %vm1133_vm2, %v1110_v23, 0.0  ;;  %v1113_v34 = vmax.f32 %v991_v24, 0.0 }
 0x131   : > { %v959_v50 = vadd.f32 %v2099_v45, %v958_v46  ;;  %v1804_v52 = vpop.f32.mrb[38].mxu0  ;;  %v1224_v19 = vsel %vm1133_vm2, %v1111_v22, 0.0  ;;  %v999_v38 = vadd.f32 %v2136_v39, %v2099_v45  ;;  %v1226_v46 = vsel %vm1133_vm2, %v1112_v29, 0.0 }
 0x132   : > { %v1209_v53 = vadd.f32 %v1208_v47, %v1207_v42  ;;  %v961_v54 = vpop.f32.mrb[39].mxu0  ;;  %v970_v58 = vadd.f32 %v1804_v52, %v2099_v45  ;;  %v1107_v63 = vmax.f32 %v967_v49, 0.0  ;;  %v1228_v47 = vsel %vm1133_vm2, %v1113_v34, 0.0 }
 0x133   : > { %v1105_v57 = vmax.f32 %v959_v50, 0.0  ;;  %v962_v59 = vadd.f32 %v2099_v45, %v961_v54  ;;  %v1114_v49 = vmax.f32 %v994_v13, 0.0  ;;  %v1007_v50 = vadd.f32 %v2099_v45, %v2157_v4 }
 0x134   : > { %v1211_v61 = vadd.f32 %v1210_v56, %v1209_v53  ;;  %v1108_v6 = vmax.f32 %v970_v58, 0.0  ;;  %v1216_v14 = vsel %vm1133_vm2, %v1107_v63, 0.0  ;;  %v1115_v51 = vmax.f32 %v999_v38, 0.0 }
 0x135   : > { %v1212_v0 = vsel %vm1133_vm2, %v1105_v57, 0.0  ;;  %v1106_v1 = vmax.f32 %v962_v59, 0.0  ;;  %v1116_v54 = vmax.f32 %v1002_v43, 0.0  ;;  %v1230_v55 = vsel %vm1133_vm2, %v1114_v49, 0.0 }
 0x136   : > { %v1213_v5 = vadd.f32 %v1212_v0, %v1211_v61  ;;  %v1218_v20 = vsel %vm1133_vm2, %v1108_v6, 0.0  ;;  %v1117_v56 = vmax.f32 %v1007_v50, 0.0  ;;  %v1010_v39 = vadd.f32 %v2099_v45, %v2162_v11 }
 0x137   : > { %v1214_v9 = vsel %vm1133_vm2, %v1106_v1, 0.0  ;;  %v1232_v48 = vsel %vm1133_vm2, %v1115_v51, 0.0  ;;  %v1015_v58 = vadd.f32 %v2155_v2, %v2099_v45  ;;  %v1234_v59 = vsel %vm1133_vm2, %v1116_v54, 0.0 }
 0x138   : > { %v1215_v12 = vadd.f32 %v1214_v9, %v1213_v5  ;;  %v1236_v4 = vsel %vm1133_vm2, %v1117_v56, 0.0  ;;  %v1018_v63 = vadd.f32 %v2160_v8, %v2099_v45  ;;  %v1118_v0 = vmax.f32 %v1010_v39, 0.0 }
 0x139   : > { %v1023_v1 = vadd.f32 %v2099_v45, %v2173_v32  ;;  %v1119_v11 = vmax.f32 %v1015_v58, 0.0  ;;  %v1026_v2 = vadd.f32 %v2099_v45, %v2178_v40  ;;  %v1031_v8 = vadd.f32 %v2171_v30, %v2099_v45 }
 0x13a   : > { %v1217_v17 = vadd.f32 %v1216_v14, %v1215_v12  ;;  %v1120_v9 = vmax.f32 %v1018_v63, 0.0  ;;  %v1238_v10 = vsel %vm1133_vm2, %v1118_v0, 0.0  ;;  %v1034_v32 = vadd.f32 %v2176_v36, %v2099_v45 }
 0x13b   : > { %v1121_v15 = vmax.f32 %v1023_v1, 0.0  ;;  %v1240_v14 = vsel %vm1133_vm2, %v1119_v11, 0.0  ;;  %v1123_v40 = vmax.f32 %v1031_v8, 0.0  ;;  %v1042_v30 = vadd.f32 %v2099_v45, %v2194_v7 }
 0x13c   : > { %v1219_v25 = vadd.f32 %v1218_v20, %v1217_v17  ;;  %v1242_v17 = vsel %vm1133_vm2, %v1120_v9, 0.0  ;;  %v1122_v20 = vmax.f32 %v1026_v2, 0.0  ;;  %v1055_v38 = vadd.f32 %v2099_v45, %v2205_v31 }
 0x13d   : > { %v1244_v18 = vsel %vm1133_vm2, %v1121_v15, 0.0  ;;  %v1248_v36 = vsel %vm1133_vm2, %v1123_v40, 0.0  ;;  %v1197_v51 = vrot.slane %v2226_v26, 4 }
 0x13e   : > { %v1221_v27 = vadd.f32 %v1220_v21, %v1219_v25  ;;  %v1039_v21 = vadd.f32 %v2099_v45, %v2189_v62  ;;  %v1124_v25 = vmax.f32 %v1034_v32, 0.0  ;;  %v1246_v22 = vsel %vm1133_vm2, %v1122_v20, 0.0  ;;  %v1284_v32 = vld [vmem:[%s2392_s6 + $0x8] sm:$0xff]  ;;  %v1286_v20 = vld [vmem:[%s2392_s6 + $0x18] sm:$0xff] }
 0x13f   : > { %v1129_v49 = vmax.f32 %v1055_v38, 0.0 }
 0x140   : > { %v1223_v35 = vadd.f32 %v1222_v33, %v1221_v27  ;;  %v1125_v27 = vmax.f32 %v1039_v21, 0.0  ;;  %v1047_v33 = vadd.f32 %v2187_v60, %v2099_v45  ;;  %v1250_v34 = vsel %vm1133_vm2, %v1124_v25, 0.0 }
 0x141   : > { %v1058_v60 = vadd.f32 %v2099_v45, %v2210_v44  ;;  %v1260_v54 = vsel %vm1133_vm2, %v1129_v49, 0.0  ;;  %v1198_v44 = vadd.f32 %v1197_v51, %v2226_v26 }
 0x142   : > { %v1225_v42 = vadd.f32 %v1224_v19, %v1223_v35  ;;  %v1252_v62 = vsel %vm1133_vm2, %v1125_v27, 0.0  ;;  %v1050_v35 = vadd.f32 %v2192_v3, %v2099_v45  ;;  %v1126_v19 = vmax.f32 %v1042_v30, 0.0 }
 0x143   : > { %v1127_v7 = vmax.f32 %v1047_v33, 0.0  ;;  %v1063_v3 = vadd.f32 %v2203_v28, %v2099_v45  ;;  %v1130_v56 = vmax.f32 %v1058_v60, 0.0 }
 0x144   : > { %v1227_v52 = vadd.f32 %v1226_v46, %v1225_v42  ;;  %v1128_v46 = vmax.f32 %v1050_v35, 0.0 }
 0x146   : > { %v1229_v53 = vadd.f32 %v1228_v47, %v1227_v52  ;;  %v1254_v47 = vsel %vm1133_vm2, %v1126_v19, 0.0  ;;  %v1256_v52 = vsel %vm1133_vm2, %v1127_v7, 0.0  ;;  %v1258_v31 = vsel %vm1133_vm2, %v1128_v46, 0.0 }
 0x148   : > { %v1231_v57 = vadd.f32 %v1230_v55, %v1229_v53  ;;  %v1066_v55 = vadd.f32 %v2208_v37, %v2099_v45 }
 0x14a   : > { %v1233_v61 = vadd.f32 %v1232_v48, %v1231_v57  ;;  %v1131_v57 = vmax.f32 %v1063_v3, 0.0  ;;  %v1132_v58 = vmax.f32 %v1066_v55, 0.0 }
 0x14c   : > { %v1235_v5 = vadd.f32 %v1234_v59, %v1233_v61  ;;  %v1262_v59 = vsel %vm1133_vm2, %v1130_v56, 0.0  ;;  %v1264_v61 = vsel %vm1133_vm2, %v1131_v57, 0.0  ;;  %v1266_v0 = vsel %vm1133_vm2, %v1132_v58, 0.0  ;;  %v1427_v57 = vld [vmem:[%s2394_s8 + $0x8] sm:$0xff] }
 0x14e   : > { %v1237_v6 = vadd.f32 %v1236_v4, %v1235_v5  ;;  %v1199_v4 = vrot.slane %v1198_v44, 2 }
 0x150   : > { %v1239_v12 = vadd.f32 %v1238_v10, %v1237_v6  ;;  %v1200_v5 = vadd.f32 %v1199_v4, %v1198_v44 }
 0x152   : > { %v1241_v16 = vadd.f32 %v1240_v14, %v1239_v12  ;;  %v1201_v37 = vrot.slane %v1200_v5, 1 }
 0x154   : > { %v1243_v23 = vadd.f32 %v1242_v17, %v1241_v16  ;;  %v1202_v10 = vadd.f32 %v1201_v37, %v1200_v5  ;;  %v1283_v16 = vld [vmem:[%s2392_s6] sm:$0xff]  ;;  %v1432_v37 = vld [vmem:[%s2397_s11 + $0x10] sm:$0xff] }
 0x155   : > { %v1375_v17 = vpack.c.bf16 %v1284_v32, %v1283_v16  ;;  %v1430_v5 = vld [vmem:[%s2397_s11] sm:$0xff] }
 0x156   : > { %v1245_v24 = vadd.f32 %v1244_v18, %v1243_v23  ;;  %v1204_v2 = vmul.f32 0.00390625, %v1202_v10  ;;  %v1285_v18 = vld [vmem:[%s2392_s6 + $0x10] sm:$0xff] }
 0x157   : > { %v1376_v21 = vpack.c.bf16 %v1286_v20, %v1285_v18 }
 0x158   : > { %v1247_v29 = vadd.f32 %v1246_v22, %v1245_v24 }
 0x15a   : > { %v1249_v13 = vadd.f32 %v1248_v36, %v1247_v29 }
 0x15c   : > { %v1251_v42 = vadd.f32 %v1250_v34, %v1249_v13 }
 0x15e   : > { %v1253_v43 = vadd.f32 %v1252_v62, %v1251_v42 }
 0x160   : > { %v1255_v50 = vadd.f32 %v1254_v47, %v1253_v43 }
 0x162   : > { %v1257_v53 = vadd.f32 %v1256_v52, %v1255_v50 }
 0x164   : > { %v1259_v39 = vadd.f32 %v1258_v31, %v1257_v53  ;;  %v1701_v53 = vld [vmem:[%s2390_s4] ss:$0 sm:$0xff] }
 0x166   : > { %v1261_v48 = vadd.f32 %v1260_v54, %v1259_v39  ;;  %v1702_v54 = vld [vmem:[%s2391_s5] ss:$0 sm:$0xff] }
 0x167   : > { %v1426_v39 = vld [vmem:[%s2394_s8] sm:$0xff] }
 0x168   : > { %v1263_v28 = vadd.f32 %v1262_v59, %v1261_v48  ;;  %v1436_v48 = vpack.c.bf16 %v1427_v57, %v1426_v39  ;;  %v1703_v59 = vld [vmem:[%s2393_s7] ss:$0 sm:$0xff] }
 0x16a   : > { %v1265_v63 = vadd.f32 %v1264_v61, %v1263_v28 }
 0x16c   : > { %v1267_v1 = vadd.f32 %v1266_v0, %v1265_v63 }
 0x16e   : > { %v1268_v11 = vrot.slane %v1267_v1, 4 }
 0x170   : > { %v1269_v45 = vadd.f32 %v1268_v11, %v1267_v1  ;;  %v1431_v11 = vld [vmem:[%s2397_s11 + $0x8] sm:$0xff] }
 0x172   : > { %v1270_v6 = vrot.slane %v1269_v45, 2 }
 0x174   : > { %v1271_v9 = vadd.f32 %v1270_v6, %v1269_v45  ;;  %v1521_v45 = vpack.c.bf16 %v1431_v11, %v1430_v5  ;;  %v1433_v6 = vld [vmem:[%s2397_s11 + $0x18] sm:$0xff] }
 0x176   : > { %v1272_v26 = vrot.slane %v1271_v9, 1 }
 0x178   : > { %v1273_v15 = vadd.f32 %v1272_v26, %v1271_v9  ;;  %v1522_v9 = vpack.c.bf16 %v1433_v6, %v1432_v37 }
 0x17a   : > { %v1274_v12 = vmul.f32 0.00390625, %v1273_v15 }
 0x17c   : > { %v1276_v14 = vsel %vm1275_vm4, %v1204_v2, %v1274_v12 }
 0x17d   : > { %v1288_v8 = vpack.c.bf16 %v1276_v14, %v1276_v14 }
 0x17f   : > { %1834 = vmatmul.mubr.msk.bf16.vlgmr.msra.gmra.mrb[24].mxu1 %vm1133_vm2, %v1288_v8 }
 0x180   : > { %1841 = vmatprep.mubr.msk.bf16.mxu1 %vm1922_vm3, %v1921_v41  ;;  %1838 = vmatpush3.bf16.msra.mxu1 %v1375_v17 }
 0x181   : > { %1839 = vmatprep.subr.bf16.mxu1 %v1921_v41 }
 0x184   : > { %1840 = vmatpush3.bf16.msra.mxu1 %v1376_v21 }
 0x185   : > { %1845 = vmatprep.subr.bf16.mxu1 %v1921_v41 }
 0x252   : > { %v1328_v23 = vpop.f32.mrb[24].mxu1 }
 0x253   : > { %v1335_v40 = vsel %vm1334_vm5, %v1328_v23, 0.0  ;;  %v1342_v24 = vmul.f32 %v1328_v23, %v1328_v23  ;;  %v1835_v25 = vpop.f32.mrb[25].mxu1 }
 0x254   : > { %v1336_v22 = vrot.slane %v1335_v40, 4  ;;  %v1331_v27 = vpop.f32.mrb[26].mxu1 }
 0x255   : > { %v1343_v30 = vsel %vm1334_vm5, %v1342_v24, 0.0  ;;  %v1836_v29 = vpop.f32.mrb[27].mxu1 }
 0x256   : > { %v1337_v36 = vadd.f32 %v1336_v22, %v1335_v40  ;;  %v1344_v33 = vrot.slane %v1343_v30, 4 }
 0x258   : > { %v1338_v34 = vrot.slane %v1337_v36, 2  ;;  %v1345_v13 = vadd.f32 %v1344_v33, %v1343_v30 }
 0x25a   : > { %v1339_v62 = vadd.f32 %v1338_v34, %v1337_v36  ;;  %v1346_v35 = vrot.slane %v1345_v13, 2 }
 0x25c   : > { %v1340_v19 = vrot.slane %v1339_v62, 1  ;;  %v1347_v38 = vadd.f32 %v1346_v35, %v1345_v13  ;;  %v1706_v35 = vld [vmem:[%s2395_s9] ss:$0 sm:$0xff] }
 0x25e   : > { %v1341_v42 = vadd.f32 %v1340_v19, %v1339_v62  ;;  %v1348_v7 = vrot.slane %v1347_v38, 1 }
 0x260   : > { %v1349_v43 = vadd.f32 %v1348_v7, %v1347_v38  ;;  %v1350_v46 = vmul.f32 0.5, %v1341_v42  ;;  %v1707_v38 = vld [vmem:[%s2396_s10] ss:$0 sm:$0xff] }
 0x262   : > { %v1351_v47 = vmul.f32 0.5, %v1349_v43  ;;  %v1352_v49 = vmul.f32 %v1350_v46, %v1350_v46  ;;  %v1355_v3 = vsub.f32 %v1328_v23, %v1350_v46 }
 0x264   : > { %v1353_v60 = vsub.f32 %v1351_v47, %v1352_v49  ;;  %v1708_v47 = vld [vmem:[%s2398_s12] ss:$0 sm:$0xff] }
 0x266   : > { %v1354_v50 = vmax.f32 %v1353_v60, 0.0 }
 0x268   : > { %v1356_v52 = vadd.f32 1e-05, %v1354_v50 }
 0x26a   : > { %1909 = vrsqrt.f32 %v1356_v52 }
 0x274   : > { %v1910_v51 = vpop.eup %1909 }
 0x275   : > { %v1358_v31 = vmul.f32 %v1910_v51, %v1355_v3 }
 0x277   : > { %v1365_v55 = vmul.f32 %v1701_v53, %v1358_v31 }
 0x279   : > { %v1372_v56 = vadd.f32 %v1702_v54, %v1365_v55 }
 0x27b   : > { %v1373_v44 = vmax.f32 %v1372_v56, 0.0 }
 0x27d   : > { %v1374_v58 = vpack.c.bf16 %v1373_v44, %v1373_v44 }
 0x27f   : > { %1842 = vmatmul.mubr.msk.bf16.vlgmr.msra.gmra.mrb[28].mxu1 %vm1133_vm2, %v1374_v58 }
 0x280   : > { %1846 = vmatpush3.bf16.msra.mxu1 %v1436_v48  ;;  %1847 = vmatprep.mubr.msk.bf16.mxu1 %vm1922_vm3, %v1921_v41 }
 0x281   : > { %1851 = vmatprep.subr.bf16.mxu1 %v1921_v41 }
 0x352   : > { %v1420_v28 = vpop.f32.mrb[28].mxu1 }
 0x353   : > { %v1421_v61 = vadd.f32 %v1703_v59, %v1420_v28  ;;  %v1843_v4 = vpop.f32.mrb[29].mxu1 }
 0x354   : > { %v1423_v63 = vpop.f32.mrb[30].mxu1 }
 0x355   : > { %v1435_v0 = vpack.c.bf16 %v1421_v61, %v1421_v61  ;;  %v1844_v1 = vpop.f32.mrb[31].mxu1 }
 0x357   : > { %1848 = vmatmul.mubr.msk.bf16.vlgmr.msra.gmra.mrb[32].mxu1 %vm1437_vm6, %v1435_v0 }
 0x358   : > { %1855 = vmatprep.mubr.msk.bf16.mxu1 %vm1922_vm3, %v1921_v41  ;;  %1852 = vmatpush3.bf16.msra.mxu1 %v1521_v45 }
 0x359   : > { %1853 = vmatprep.subr.bf16.mxu1 %v1921_v41 }
 0x35c   : > { %1854 = vmatpush3.bf16.msra.mxu1 %v1522_v9 }
 0x42a   : > { %v1475_v10 = vpop.f32.mrb[32].mxu1 }
 0x42b   : > { %v1481_v26 = vsel %vm1334_vm5, %v1475_v10, 0.0  ;;  %v1488_v15 = vmul.f32 %v1475_v10, %v1475_v10  ;;  %v1849_v2 = vpop.f32.mrb[33].mxu1 }
 0x42c   : > { %v1482_v12 = vrot.slane %v1481_v26, 4  ;;  %v1478_v14 = vpop.f32.mrb[34].mxu1 }
 0x42d   : > { %v1489_v8 = vsel %vm1334_vm5, %v1488_v15, 0.0  ;;  %v1850_v41 = vpop.f32.mrb[35].mxu1 }
 0x42e   : > { %v1483_v16 = vadd.f32 %v1482_v12, %v1481_v26  ;;  %v1490_v32 = vrot.slane %v1489_v8, 4 }
 0x430   : > { %v1484_v17 = vrot.slane %v1483_v16, 2  ;;  %v1491_v18 = vadd.f32 %v1490_v32, %v1489_v8 }
 0x432   : > { %v1485_v20 = vadd.f32 %v1484_v17, %v1483_v16  ;;  %v1492_v21 = vrot.slane %v1491_v18, 2 }
 0x434   : > { %v1486_v23 = vrot.slane %v1485_v20, 1  ;;  %v1493_v40 = vadd.f32 %v1492_v21, %v1491_v18 }
 0x436   : > { %v1487_v24 = vadd.f32 %v1486_v23, %v1485_v20  ;;  %v1494_v25 = vrot.slane %v1493_v40, 1 }
 0x438   : > { %v1495_v22 = vadd.f32 %v1494_v25, %v1493_v40  ;;  %v1496_v27 = vmul.f32 0.5, %v1487_v24 }
 0x43a   : > { %v1497_v30 = vmul.f32 0.5, %v1495_v22  ;;  %v1498_v29 = vmul.f32 %v1496_v27, %v1496_v27  ;;  %v1501_v13 = vsub.f32 %v1475_v10, %v1496_v27 }
 0x43c   : > { %v1499_v36 = vsub.f32 %v1497_v30, %v1498_v29 }
 0x43e   : > { %v1500_v33 = vmax.f32 %v1499_v36, 0.0 }
 0x440   : > { %v1502_v34 = vadd.f32 1e-05, %v1500_v33 }
 0x442   : > { %1911 = vrsqrt.f32 %v1502_v34 }
 0x44c   : > { %v1912_v62 = vpop.eup %1911 }
 0x44d   : > { %v1504_v19 = vmul.f32 %v1912_v62, %v1501_v13 }
 0x44f   : > { %v1511_v42 = vmul.f32 %v1706_v35, %v1504_v19 }
 0x451   : > { %v1518_v7 = vadd.f32 %v1707_v38, %v1511_v42 }
 0x453   : > { %v1519_v43 = vmax.f32 %v1518_v7, 0.0 }
 0x455   : > { %v1520_v46 = vpack.c.bf16 %v1519_v43, %v1519_v43 }
 0x457   : > { %1856 = vmatmul.mubr.msk.bf16.vlgmr.msra.gmra.mrb[36].mxu1 %vm1133_vm2, %v1520_v46 }
 0x52a   : > { %v1566_v49 = vpop.f32.mrb[36].mxu1 }
 0x52b   : > { %v1567_v60 = vadd.f32 %v1708_v47, %v1566_v49  ;;  %v1857_v50 = vpop.f32.mrb[37].mxu1 }
 0x52c   : > { %v1569_v52 = vpop.f32.mrb[38].mxu1 }
 0x52d   : > { %1573 = vst.msk [vmem:[%s438_s24] sm:$0x3] %vm1572_vm7, %v1567_v60  ;;  %v1858_v3 = vpop.f32.mrb[39].mxu1 }
 0x52e PF: > { %s23_s25 = sadd.s32 1, %s1919_s25  }
 0x52f   : > { %p20_p4 = scmp.ge.s32.totalorder %s23_s25, 4  }
 0x531   :  { %22 = sbr.rel (!%p20_p4) target bundleno = 1 (0x1), region = 102 }

</bundles_post_ra>
